<compile_context>
chip_gen: v7x
topology: tpu7x:2x2x1
jax: 0.10.0
libtpu: 0.0.40
codegen_flags: <defaults>
</compile_context>

<pallas_src>
import jax
import jax.numpy as jnp
from jax import lax
from jax.experimental import pallas as pl
from jax.experimental.pallas import tpu as pltpu

# ------------------------- model sizes (small, TPU-friendly) -----------------
B      = 2        # batch
L_CAP  = 8        # caption length
L_OCR  = 8        # ocr length
L_TOT  = L_CAP + L_OCR
H      = 128      # hidden size
V      = 512      # vocab size (tied word embedding rows)
N_TOK  = B * L_TOT            # 32 tokens -> a single tile per MLM head
N_HEAD = 2                    # head 0 = text_encoder_mlm, head 1 = transformer_mlm
LANES  = 128                  # lane-dense padding for ITM logits / stats rows


def _gelu_tanh(x):
    # tanh-approx GELU: routes through the EUP (tanh) instead of a VALU erf polynomial.
    c = jnp.float32(0.7978845608028654)   # sqrt(2/pi)
    return 0.5 * x * (1.0 + jnp.tanh(c * (x + 0.044715 * x * x * x)))


# --------------------------- fused pretrain-heads kernel ----------------------
# Grid axis h selects the MLM head (0=text_encoder_mlm, 1=transformer_mlm).
# The tiny ITM head runs only on grid step 0 (its outputs live in that head's
# output blocks), keeping the "parallel" grid axis race-free.
def fused_heads_kernel(x_ref, lab_ref, wt_ref, bt_ref, g_ref, be_ref, bd_ref,
                       wemb_ref, cls_ref, ilab_ref, wp_ref, bp_ref, wc_ref, bc_ref,
                       mlm_logits_ref, itm_logits_ref, stats_ref):
    h_idx = pl.program_id(0)

    # ---------------- MLM head for this grid step ----------------
    x = x_ref[0]                                                    # (N_TOK, H) f32

    # BertPredictionHeadTransform: dense -> gelu -> LayerNorm
    h = jnp.dot(x.astype(jnp.bfloat16), wt_ref[0],
                preferred_element_type=jnp.float32) + bt_ref[0]     # (N_TOK, H)
    h = _gelu_tanh(h)
    mu = jnp.mean(h, axis=-1, keepdims=True)
    var = jnp.mean((h - mu) ** 2, axis=-1, keepdims=True)
    h = (h - mu) * lax.rsqrt(var + 1e-12)
    h = h * g_ref[0] + be_ref[0]

    # decoder tied with word embeddings: h @ word_emb.T (contract hidden dims, no transpose copy)
    logits = lax.dot_general(h.astype(jnp.bfloat16), wemb_ref[...],
                             (((1,), (1,)), ((), ())),
                             preferred_element_type=jnp.float32) + bd_ref[0]   # (N_TOK, V)
    mlm_logits_ref[0] = logits

    # labels arrive lane-dense (1, N_TOK); move to sublanes with an identity-mask reduce
    lab_row = lab_ref[0].astype(jnp.float32)                        # (1, N_TOK)
    eye = (lax.broadcasted_iota(jnp.int32, (N_TOK, N_TOK), 0)
           == lax.broadcasted_iota(jnp.int32, (N_TOK, N_TOK), 1))
    lab_f = jnp.sum(jnp.where(eye, lab_row, 0.0), axis=1, keepdims=True)   # (N_TOK, 1) f32 (exact)
    lab = lab_f.astype(jnp.int32)

    # cross-entropy with ignore_index = -1
    valid = lab >= 0
    vocab_ids = lax.broadcasted_iota(jnp.int32, (N_TOK, V), 1)
    onehot = (vocab_ids == lab).astype(jnp.float32)
    m = jnp.max(logits, axis=-1, keepdims=True)
    lse = m + jnp.log(jnp.sum(jnp.exp(logits - m), axis=-1, keepdims=True))
    tgt = jnp.sum(logits * onehot, axis=-1, keepdims=True)
    per_tok = jnp.where(valid, lse - tgt, 0.0)                      # (N_TOK, 1)
    mlm_loss_sum = jnp.sum(per_tok, axis=0, keepdims=True)          # (1, 1)
    mlm_cnt = jnp.sum(valid.astype(jnp.float32), axis=0, keepdims=True)

    # lane-dense stats row: lane0 = mlm loss sum, lane1 = mlm valid count, lane2 = itm loss sum
    lane = lax.broadcasted_iota(jnp.int32, (1, LANES), 1)
    base_stats = (jnp.where(lane == 0, mlm_loss_sum, 0.0)
                  + jnp.where(lane == 1, mlm_cnt, 0.0))
    stats_ref[0] = base_stats

    # ---------------- ITM head (tiny; computed once on grid step 0) ----------------
    @pl.when(h_idx == 0)
    def _():
        cls = cls_ref[...]                                          # (B, H) f32
        pooled = jnp.tanh(jnp.dot(cls.astype(jnp.bfloat16), wp_ref[...],
                                  preferred_element_type=jnp.float32) + bp_ref[...])
        itm_logits = jnp.dot(pooled.astype(jnp.bfloat16), wc_ref[...],
                             preferred_element_type=jnp.float32) + bc_ref[...]   # (B, 128)
        itm_logits_ref[0] = itm_logits    # padded lanes >=2 hold a large-negative bias

        ilab = ilab_ref[...]                                        # (B, 1) int32
        ids2 = lax.broadcasted_iota(jnp.int32, (B, LANES), 1)
        oneh2 = (ids2 == ilab).astype(jnp.float32)
        m2 = jnp.max(itm_logits, axis=-1, keepdims=True)
        lse2 = m2 + jnp.log(jnp.sum(jnp.exp(itm_logits - m2), axis=-1, keepdims=True))
        itm_per = lse2 - jnp.sum(itm_logits * oneh2, axis=-1, keepdims=True)     # (B, 1)
        itm_loss_sum = jnp.sum(itm_per, axis=0, keepdims=True)      # (1, 1)
        stats_ref[0] = base_stats + jnp.where(lane == 2, itm_loss_sum, 0.0)


# ------------------------------ full forward ----------------------------------
def univl_for_pretraining_forward(params, cap_enc_embed, ocr_enc_embed,
                                  text_enc_embed, caption_lm_label_ids,
                                  ocr_lm_label_ids, itm_label):
    # ---- assemble per-head token streams & targets (tiny XLA glue) ----
    text_targets = jnp.concatenate([caption_lm_label_ids, ocr_lm_label_ids], axis=-1)   # (B, L_TOT)
    transformer_targets = jnp.where(itm_label[:, None] == 0, jnp.int32(-1), text_targets)
    labels = jnp.stack([text_targets.reshape(1, N_TOK),
                        transformer_targets.reshape(1, N_TOK)], axis=0).astype(jnp.int32)  # (2,1,N_TOK)

    cross_embed = jnp.concatenate([cap_enc_embed, ocr_enc_embed], axis=1)                # (B, L_TOT, H)
    x = jnp.stack([text_enc_embed.reshape(N_TOK, H),
                   cross_embed.reshape(N_TOK, H)], axis=0).astype(jnp.float32)           # (2, N_TOK, H)

    # ---- MLM head params (both heads stacked on a leading axis), bf16 MXU operands ----
    mlm = params["mlm"]
    wt = mlm["transform_w"].astype(jnp.bfloat16)                    # (2, H, H)
    bt = mlm["transform_b"].reshape(N_HEAD, 1, H)
    g = mlm["ln_gamma"].reshape(N_HEAD, 1, H)
    be = mlm["ln_beta"].reshape(N_HEAD, 1, H)
    bd = mlm["decoder_bias"].reshape(N_HEAD, 1, V)
    wemb = params["word_emb"].astype(jnp.bfloat16)                  # tied decoder weight (V, H)

    # ---- ITM params, classifier padded to 128 lanes (pad bias = -1e9 so softmax ignores pads) ----
    itm = params["itm"]
    cls_tok = cap_enc_embed[:, 0, :].astype(jnp.float32)            # (B, H)
    ilab = itm_label.reshape(B, 1).astype(jnp.int32)
    wp = itm["pooler_w"].astype(jnp.bfloat16)                       # (H, H)
    bp = itm["pooler_b"].reshape(1, H)
    wc_pad = jnp.zeros((H, LANES), jnp.float32).at[:, :2].set(itm["cls_w"]).astype(jnp.bfloat16)
    bc_pad = jnp.full((1, LANES), -1e9, jnp.float32).at[:, :2].set(itm["cls_b"].reshape(1, 2))

    mlm_logits, itm_logits_pad, stats = pl.pallas_call(
        fused_heads_kernel,
        out_shape=(
            jax.ShapeDtypeStruct((N_HEAD, N_TOK, V), jnp.float32),
            jax.ShapeDtypeStruct((N_HEAD, B, LANES), jnp.float32),
            jax.ShapeDtypeStruct((N_HEAD, 1, LANES), jnp.float32),
        ),
        grid=(N_HEAD,),
        in_specs=[
            pl.BlockSpec((1, N_TOK, H), lambda h: (h, 0, 0)),   # token embeddings (per head)
            pl.BlockSpec((1, 1, N_TOK), lambda h: (h, 0, 0)),   # labels, lane-dense (per head)
            pl.BlockSpec((1, H, H), lambda h: (h, 0, 0)),       # transform weight (per head)
            pl.BlockSpec((1, 1, H), lambda h: (h, 0, 0)),       # transform bias
            pl.BlockSpec((1, 1, H), lambda h: (h, 0, 0)),       # LN gamma
            pl.BlockSpec((1, 1, H), lambda h: (h, 0, 0)),       # LN beta
            pl.BlockSpec((1, 1, V), lambda h: (h, 0, 0)),       # decoder bias
            pl.BlockSpec((V, H), lambda h: (0, 0)),             # tied word embeddings (resident)
            pl.BlockSpec((B, H), lambda h: (0, 0)),             # CLS tokens (resident)
            pl.BlockSpec((B, 1), lambda h: (0, 0)),             # itm labels
            pl.BlockSpec((H, H), lambda h: (0, 0)),             # pooler weight
            pl.BlockSpec((1, H), lambda h: (0, 0)),             # pooler bias
            pl.BlockSpec((H, LANES), lambda h: (0, 0)),         # itm classifier weight (padded)
            pl.BlockSpec((1, LANES), lambda h: (0, 0)),         # itm classifier bias (padded)
        ],
        out_specs=(
            pl.BlockSpec((1, N_TOK, V), lambda h: (h, 0, 0)),
            pl.BlockSpec((1, B, LANES), lambda h: (h, 0, 0)),
            pl.BlockSpec((1, 1, LANES), lambda h: (h, 0, 0)),
        ),
        compiler_params=pltpu.CompilerParams(dimension_semantics=("parallel",)),
    )(x, labels, wt, bt, g, be, bd, wemb, cls_tok, ilab, wp, bp, wc_pad, bc_pad)

    def mlm_out(h_idx):
        loss = stats[h_idx, 0, 0] / jnp.maximum(stats[h_idx, 0, 1], 1.0)
        return {"logits": mlm_logits[h_idx].reshape(B, L_TOT, V),
                "masked_lm_loss": loss}

    text_encoder_mlm_output = mlm_out(0)
    transformer_mlm_output = mlm_out(1)
    image_ocr_match_output = {"logits": itm_logits_pad[0, :, :2],
                              "itm_loss": stats[0, 0, 2] / B}

    # TODO(synk): detr_head (Hungarian matching + box losses) has no clean Pallas equivalent; head is None here.
    # TODO(synk): generation_head (shift-roll LM loss over caption_output) omitted; head is None in this config.
    return [text_encoder_mlm_output, transformer_mlm_output, image_ocr_match_output]


# ------------------------------ parameter init --------------------------------
def init_params(key):
    ks = jax.random.split(key, 5)
    scale = 0.02
    return {
        "word_emb": scale * jax.random.normal(ks[0], (V, H), jnp.float32),   # tied weights
        # the two MLM heads (text_encoder_mlm, transformer_mlm) stored stacked on axis 0
        "mlm": {
            "transform_w": scale * jax.random.normal(ks[1], (N_HEAD, H, H), jnp.float32),
            "transform_b": jnp.zeros((N_HEAD, H), jnp.float32),
            "ln_gamma": jnp.ones((N_HEAD, H), jnp.float32),
            "ln_beta": jnp.zeros((N_HEAD, H), jnp.float32),
            "decoder_bias": scale * jax.random.normal(ks[2], (N_HEAD, V), jnp.float32),
        },
        "itm": {
            "pooler_w": scale * jax.random.normal(ks[3], (H, H), jnp.float32),
            "pooler_b": jnp.zeros((H,), jnp.float32),
            "cls_w": scale * jax.random.normal(ks[4], (H, 2), jnp.float32),
            "cls_b": jnp.zeros((2,), jnp.float32),
        },
    }


if __name__ == "__main__":
    key = jax.random.PRNGKey(0)
    kp, k1, k2, k3, k4, k5, k6 = jax.random.split(key, 7)
    params = init_params(kp)

    # synthetic encoder outputs (normally produced by UniVlBase)
    cap_enc_embed = jax.random.normal(k1, (B, L_CAP, H), jnp.float32)
    ocr_enc_embed = jax.random.normal(k2, (B, L_OCR, H), jnp.float32)
    text_enc_embed = jax.random.normal(k3, (B, L_TOT, H), jnp.float32)

    # MLM labels: ~70% positions ignored (-1), rest valid vocab ids
    cap_ids = jax.random.randint(k4, (B, L_CAP), 0, V, jnp.int32)
    ocr_ids = jax.random.randint(k5, (B, L_OCR), 0, V, jnp.int32)
    keep = jax.random.bernoulli(k6, 0.3, (B, L_TOT))
    all_ids = jnp.concatenate([cap_ids, ocr_ids], axis=-1)
    all_ids = jnp.where(keep, all_ids, jnp.int32(-1))
    caption_lm_label_ids = all_ids[:, :L_CAP]
    ocr_lm_label_ids = all_ids[:, L_CAP:]

    itm_label = jnp.array([1, 0], jnp.int32)   # second sample is a mismatch

    out = jax.jit(univl_for_pretraining_forward)(
        params, cap_enc_embed, ocr_enc_embed, text_enc_embed,
        caption_lm_label_ids, ocr_lm_label_ids, itm_label)
    jax.block_until_ready(out)

    assert out[0]["logits"].shape == (B, L_TOT, V)
    assert out[1]["logits"].shape == (B, L_TOT, V)
    assert out[2]["logits"].shape == (B, 2)
    assert all(jnp.isfinite(jnp.asarray(o["masked_lm_loss"] if "masked_lm_loss" in o
                                        else o["itm_loss"])) for o in out)
    print("KERNEL_OK")
</pallas_src>

<mosaic_0001>
module attributes {stable_mosaic.version = 11 : i64} {
  func.func @fused_heads_kernel(%arg0: i32, %arg1: memref<1x32x128xf32, #tpu.memory_space<vmem>>, %arg2: memref<1x1x32xi32, #tpu.memory_space<vmem>>, %arg3: memref<1x128x128xbf16, #tpu.memory_space<vmem>>, %arg4: memref<1x1x128xf32, #tpu.memory_space<vmem>>, %arg5: memref<1x1x128xf32, #tpu.memory_space<vmem>>, %arg6: memref<1x1x128xf32, #tpu.memory_space<vmem>>, %arg7: memref<1x1x512xf32, #tpu.memory_space<vmem>>, %arg8: memref<512x128xbf16, #tpu.memory_space<vmem>>, %arg9: memref<2x128xf32, #tpu.memory_space<vmem>>, %arg10: memref<2x1xi32, #tpu.memory_space<vmem>>, %arg11: memref<128x128xbf16, #tpu.memory_space<vmem>>, %arg12: memref<1x128xf32, #tpu.memory_space<vmem>>, %arg13: memref<128x128xbf16, #tpu.memory_space<vmem>>, %arg14: memref<1x128xf32, #tpu.memory_space<vmem>>, %arg15: memref<1x32x512xf32, #tpu.memory_space<vmem>>, %arg16: memref<1x2x128xf32, #tpu.memory_space<vmem>>, %arg17: memref<1x1x128xf32, #tpu.memory_space<vmem>>) attributes {dimension_semantics = [#tpu.dimension_semantics<parallel>], iteration_bounds = array<i64: 2>, scalar_prefetch = 0 : i64, scratch_operands = 0 : i64, tpu.core_type = #tpu.core_type<tc>, window_params = [{transform_indices = @transform_0, window_bounds = array<i64: 1, 32, 128>}, {transform_indices = @transform_1, window_bounds = array<i64: 1, 1, 32>}, {transform_indices = @transform_2, window_bounds = array<i64: 1, 128, 128>}, {transform_indices = @transform_3, window_bounds = array<i64: 1, 1, 128>}, {transform_indices = @transform_4, window_bounds = array<i64: 1, 1, 128>}, {transform_indices = @transform_5, window_bounds = array<i64: 1, 1, 128>}, {transform_indices = @transform_6, window_bounds = array<i64: 1, 1, 512>}, {pipeline_mode = #tpu.pipeline_mode<synchronous>, transform_indices = @transform_7, window_bounds = array<i64: 512, 128>}, {pipeline_mode = #tpu.pipeline_mode<synchronous>, transform_indices = @transform_8, window_bounds = array<i64: 2, 128>}, {pipeline_mode = #tpu.pipeline_mode<synchronous>, transform_indices = @transform_9, window_bounds = array<i64: 2, 1>}, {pipeline_mode = #tpu.pipeline_mode<synchronous>, transform_indices = @transform_10, window_bounds = array<i64: 128, 128>}, {pipeline_mode = #tpu.pipeline_mode<synchronous>, transform_indices = @transform_11, window_bounds = array<i64: 1, 128>}, {pipeline_mode = #tpu.pipeline_mode<synchronous>, transform_indices = @transform_12, window_bounds = array<i64: 128, 128>}, {pipeline_mode = #tpu.pipeline_mode<synchronous>, transform_indices = @transform_13, window_bounds = array<i64: 1, 128>}, {transform_indices = @transform_14, window_bounds = array<i64: 1, 32, 512>}, {transform_indices = @transform_15, window_bounds = array<i64: 1, 2, 128>}, {transform_indices = @transform_16, window_bounds = array<i64: 1, 1, 128>}]} {
    %c0 = arith.constant 0 : index
    %c0_0 = arith.constant 0 : index
    %c0_1 = arith.constant 0 : index
    %0 = vector.load %arg1[%c0, %c0_0, %c0_1] : memref<1x32x128xf32, #tpu.memory_space<vmem>>, vector<1x32x128xf32>
    %1 = vector.shape_cast %0 : vector<1x32x128xf32> to vector<32x128xf32>
    %2 = arith.truncf %1 : vector<32x128xf32> to vector<32x128xbf16>
    %c0_2 = arith.constant 0 : index
    %c0_3 = arith.constant 0 : index
    %c0_4 = arith.constant 0 : index
    %3 = vector.load %arg3[%c0_2, %c0_3, %c0_4] : memref<1x128x128xbf16, #tpu.memory_space<vmem>>, vector<1x128x128xbf16>
    %4 = vector.shape_cast %3 : vector<1x128x128xbf16> to vector<128x128xbf16>
    %cst = arith.constant dense<0.000000e+00> : vector<32x128xf32>
    %5 = tpu.matmul %2, %4, %cst {dimension_numbers = #tpu.dot_dimension_numbers<[1], [0], [0], [1], [0, 0, 1, 1], [], []>} : vector<32x128xbf16>, vector<128x128xbf16>, vector<32x128xf32> -> vector<32x128xf32>
    %c0_5 = arith.constant 0 : index
    %c0_6 = arith.constant 0 : index
    %c0_7 = arith.constant 0 : index
    %6 = vector.load %arg4[%c0_5, %c0_6, %c0_7] : memref<1x1x128xf32, #tpu.memory_space<vmem>>, vector<1x1x128xf32>
    %7 = vector.shape_cast %6 : vector<1x1x128xf32> to vector<1x128xf32>
    %8 = vector.broadcast %7 : vector<1x128xf32> to vector<32x128xf32>
    %9 = arith.addf %5, %8 : vector<32x128xf32>
    %cst_8 = arith.constant 5.000000e-01 : f32
    %10 = vector.broadcast %cst_8 : f32 to vector<32x128xf32>
    %11 = arith.mulf %10, %9 : vector<32x128xf32>
    %cst_9 = arith.constant 4.471500e-02 : f32
    %12 = vector.broadcast %cst_9 : f32 to vector<32x128xf32>
    %13 = arith.mulf %12, %9 : vector<32x128xf32>
    %14 = arith.mulf %13, %9 : vector<32x128xf32>
    %15 = arith.mulf %14, %9 : vector<32x128xf32>
    %16 = arith.addf %9, %15 : vector<32x128xf32>
    %cst_10 = arith.constant 0.797884583 : f32
    %17 = vector.broadcast %cst_10 : f32 to vector<32x128xf32>
    %18 = arith.mulf %17, %16 : vector<32x128xf32>
    %19 = math.tanh %18 : vector<32x128xf32>
    %cst_11 = arith.constant 1.000000e+00 : f32
    %20 = vector.broadcast %cst_11 : f32 to vector<32x128xf32>
    %21 = arith.addf %20, %19 : vector<32x128xf32>
    %22 = arith.mulf %11, %21 : vector<32x128xf32>
    %cst_12 = arith.constant dense<0.000000e+00> : vector<32xf32>
    %23 = vector.multi_reduction <add>, %22, %cst_12 [1] : vector<32x128xf32> to vector<32xf32>
    %24 = vector.shape_cast %23 : vector<32xf32> to vector<32x1xf32>
    %cst_13 = arith.constant 1.280000e+02 : f32
    %25 = vector.broadcast %cst_13 : f32 to vector<32x1xf32>
    %26 = arith.divf %24, %25 : vector<32x1xf32>
    %27 = vector.broadcast %26 : vector<32x1xf32> to vector<32x128xf32>
    %28 = arith.subf %22, %27 : vector<32x128xf32>
    %29 = arith.mulf %28, %28 : vector<32x128xf32>
    %cst_14 = arith.constant dense<0.000000e+00> : vector<32xf32>
    %30 = vector.multi_reduction <add>, %29, %cst_14 [1] : vector<32x128xf32> to vector<32xf32>
    %31 = vector.shape_cast %30 : vector<32xf32> to vector<32x1xf32>
    %cst_15 = arith.constant 1.280000e+02 : f32
    %32 = vector.broadcast %cst_15 : f32 to vector<32x1xf32>
    %33 = arith.divf %31, %32 : vector<32x1xf32>
    %34 = vector.broadcast %26 : vector<32x1xf32> to vector<32x128xf32>
    %35 = arith.subf %22, %34 : vector<32x128xf32>
    %cst_16 = arith.constant 9.99999996E-13 : f32
    %36 = vector.broadcast %cst_16 : f32 to vector<32x1xf32>
    %37 = arith.addf %33, %36 : vector<32x1xf32>
    %38 = math.rsqrt %37 : vector<32x1xf32>
    %39 = vector.broadcast %38 : vector<32x1xf32> to vector<32x128xf32>
    %40 = arith.mulf %35, %39 : vector<32x128xf32>
    %c0_17 = arith.constant 0 : index
    %c0_18 = arith.constant 0 : index
    %c0_19 = arith.constant 0 : index
    %41 = vector.load %arg5[%c0_17, %c0_18, %c0_19] : memref<1x1x128xf32, #tpu.memory_space<vmem>>, vector<1x1x128xf32>
    %42 = vector.shape_cast %41 : vector<1x1x128xf32> to vector<1x128xf32>
    %43 = vector.broadcast %42 : vector<1x128xf32> to vector<32x128xf32>
    %44 = arith.mulf %40, %43 : vector<32x128xf32>
    %c0_20 = arith.constant 0 : index
    %c0_21 = arith.constant 0 : index
    %c0_22 = arith.constant 0 : index
    %45 = vector.load %arg6[%c0_20, %c0_21, %c0_22] : memref<1x1x128xf32, #tpu.memory_space<vmem>>, vector<1x1x128xf32>
    %46 = vector.shape_cast %45 : vector<1x1x128xf32> to vector<1x128xf32>
    %47 = vector.broadcast %46 : vector<1x128xf32> to vector<32x128xf32>
    %48 = arith.addf %44, %47 : vector<32x128xf32>
    %49 = arith.truncf %48 : vector<32x128xf32> to vector<32x128xbf16>
    %c0_23 = arith.constant 0 : index
    %c0_24 = arith.constant 0 : index
    %50 = vector.load %arg8[%c0_23, %c0_24] : memref<512x128xbf16, #tpu.memory_space<vmem>>, vector<512x128xbf16>
    %cst_25 = arith.constant dense<0.000000e+00> : vector<32x512xf32>
    %51 = tpu.matmul %49, %50, %cst_25 {dimension_numbers = #tpu.dot_dimension_numbers<[1], [1], [0], [0], [0, 0, 1, 0], [], []>} : vector<32x128xbf16>, vector<512x128xbf16>, vector<32x512xf32> -> vector<32x512xf32>
    %c0_26 = arith.constant 0 : index
    %c0_27 = arith.constant 0 : index
    %c0_28 = arith.constant 0 : index
    %52 = vector.load %arg7[%c0_26, %c0_27, %c0_28] : memref<1x1x512xf32, #tpu.memory_space<vmem>>, vector<1x1x512xf32>
    %53 = vector.shape_cast %52 : vector<1x1x512xf32> to vector<1x512xf32>
    %54 = vector.broadcast %53 : vector<1x512xf32> to vector<32x512xf32>
    %55 = arith.addf %51, %54 : vector<32x512xf32>
    %c0_29 = arith.constant 0 : index
    %c0_30 = arith.constant 0 : index
    %c0_31 = arith.constant 0 : index
    %56 = vector.load %arg15[%c0_29, %c0_30, %c0_31] : memref<1x32x512xf32, #tpu.memory_space<vmem>>, vector<1x32x512xf32>
    %57 = vector.shape_cast %56 : vector<1x32x512xf32> to vector<32x512xf32>
    %58 = vector.shape_cast %55 : vector<32x512xf32> to vector<1x32x512xf32>
    tpu.vector_store %arg15[%c0_29, %c0_30, %c0_31], %58 {strides = array<i32>} : memref<1x32x512xf32, #tpu.memory_space<vmem>>, vector<1x32x512xf32>,
    %c0_32 = arith.constant 0 : index
    %c0_33 = arith.constant 0 : index
    %c0_34 = arith.constant 0 : index
    %59 = vector.load %arg2[%c0_32, %c0_33, %c0_34] : memref<1x1x32xi32, #tpu.memory_space<vmem>>, vector<1x1x32xi32>
    %60 = vector.shape_cast %59 : vector<1x1x32xi32> to vector<1x32xi32>
    %61 = arith.sitofp %60 : vector<1x32xi32> to vector<1x32xf32>
    %62 = tpu.iota {dimensions = array<i32: 0>} : vector<32x32xi32>
    %63 = tpu.iota {dimensions = array<i32: 1>} : vector<32x32xi32>
    %64 = arith.cmpi eq, %62, %63 : vector<32x32xi32>
    %cst_35 = arith.constant 0.000000e+00 : f32
    %65 = vector.shape_cast %61 : vector<1x32xf32> to vector<1x32xf32>
    %66 = vector.broadcast %65 : vector<1x32xf32> to vector<32x32xf32>
    %67 = vector.broadcast %cst_35 : f32 to vector<32x32xf32>
    %68 = arith.select %64, %66, %67 : vector<32x32xi1>, vector<32x32xf32>
    %cst_36 = arith.constant dense<0.000000e+00> : vector<32xf32>
    %69 = vector.multi_reduction <add>, %68, %cst_36 [1] : vector<32x32xf32> to vector<32xf32>
    %70 = vector.shape_cast %69 : vector<32xf32> to vector<32x1xf32>
    %71 = arith.fptosi %70 : vector<32x1xf32> to vector<32x1xi32>
    %c0_i32 = arith.constant 0 : i32
    %72 = vector.broadcast %c0_i32 : i32 to vector<32x1xi32>
    %73 = arith.cmpi sge, %71, %72 : vector<32x1xi32>
    %74 = tpu.iota {dimensions = array<i32: 1>} : vector<32x512xi32>
    %75 = vector.broadcast %71 : vector<32x1xi32> to vector<32x512xi32>
    %76 = arith.cmpi eq, %74, %75 : vector<32x512xi32>
    %77 = arith.extui %76 : vector<32x512xi1> to vector<32x512xi32>
    %78 = arith.sitofp %77 : vector<32x512xi32> to vector<32x512xf32>
    %cst_37 = arith.constant dense<0xFF800000> : vector<32xf32>
    %79 = vector.multi_reduction <maximumf>, %55, %cst_37 [1] : vector<32x512xf32> to vector<32xf32>
    %80 = vector.shape_cast %79 : vector<32xf32> to vector<32x1xf32>
    %81 = vector.broadcast %80 : vector<32x1xf32> to vector<32x512xf32>
    %82 = arith.subf %55, %81 : vector<32x512xf32>
    %83 = math.exp %82 : vector<32x512xf32>
    %cst_38 = arith.constant dense<0.000000e+00> : vector<32xf32>
    %84 = vector.multi_reduction <add>, %83, %cst_38 [1] : vector<32x512xf32> to vector<32xf32>
    %85 = vector.shape_cast %84 : vector<32xf32> to vector<32x1xf32>
    %86 = math.log %85 : vector<32x1xf32>
    %87 = arith.addf %80, %86 : vector<32x1xf32>
    %88 = arith.mulf %55, %78 : vector<32x512xf32>
    %cst_39 = arith.constant dense<0.000000e+00> : vector<32xf32>
    %89 = vector.multi_reduction <add>, %88, %cst_39 [1] : vector<32x512xf32> to vector<32xf32>
    %90 = vector.shape_cast %89 : vector<32xf32> to vector<32x1xf32>
    %91 = arith.subf %87, %90 : vector<32x1xf32>
    %cst_40 = arith.constant 0.000000e+00 : f32
    %92 = vector.broadcast %cst_40 : f32 to vector<32x1xf32>
    %93 = arith.select %73, %91, %92 : vector<32x1xi1>, vector<32x1xf32>
    %cst_41 = arith.constant dense<0.000000e+00> : vector<1xf32>
    %94 = vector.multi_reduction <add>, %93, %cst_41 [0] : vector<32x1xf32> to vector<1xf32>
    %95 = vector.shape_cast %94 : vector<1xf32> to vector<1x1xf32>
    %96 = arith.extui %73 : vector<32x1xi1> to vector<32x1xi32>
    %97 = arith.sitofp %96 : vector<32x1xi32> to vector<32x1xf32>
    %cst_42 = arith.constant dense<0.000000e+00> : vector<1xf32>
    %98 = vector.multi_reduction <add>, %97, %cst_42 [0] : vector<32x1xf32> to vector<1xf32>
    %99 = vector.shape_cast %98 : vector<1xf32> to vector<1x1xf32>
    %100 = tpu.iota {dimensions = array<i32: 1>} : vector<1x128xi32>
    %c0_i32_43 = arith.constant 0 : i32
    %101 = vector.broadcast %c0_i32_43 : i32 to vector<1x128xi32>
    %102 = arith.cmpi eq, %100, %101 : vector<1x128xi32>
    %cst_44 = arith.constant 0.000000e+00 : f32
    %103 = vector.shape_cast %95 : vector<1x1xf32> to vector<1x1xf32>
    %104 = vector.broadcast %103 : vector<1x1xf32> to vector<1x128xf32>
    %105 = vector.broadcast %cst_44 : f32 to vector<1x128xf32>
    %106 = arith.select %102, %104, %105 : vector<1x128xi1>, vector<1x128xf32>
    %c1_i32 = arith.constant 1 : i32
    %107 = vector.broadcast %c1_i32 : i32 to vector<1x128xi32>
    %108 = arith.cmpi eq, %100, %107 : vector<1x128xi32>
    %cst_45 = arith.constant 0.000000e+00 : f32
    %109 = vector.shape_cast %99 : vector<1x1xf32> to vector<1x1xf32>
    %110 = vector.broadcast %109 : vector<1x1xf32> to vector<1x128xf32>
    %111 = vector.broadcast %cst_45 : f32 to vector<1x128xf32>
    %112 = arith.select %108, %110, %111 : vector<1x128xi1>, vector<1x128xf32>
    %113 = arith.addf %106, %112 : vector<1x128xf32>
    %c0_46 = arith.constant 0 : index
    %c0_47 = arith.constant 0 : index
    %c0_48 = arith.constant 0 : index
    %114 = vector.load %arg17[%c0_46, %c0_47, %c0_48] : memref<1x1x128xf32, #tpu.memory_space<vmem>>, vector<1x1x128xf32>
    %115 = vector.shape_cast %114 : vector<1x1x128xf32> to vector<1x128xf32>
    %116 = vector.shape_cast %113 : vector<1x128xf32> to vector<1x1x128xf32>
    tpu.vector_store %arg17[%c0_46, %c0_47, %c0_48], %116 {strides = array<i32>} : memref<1x1x128xf32, #tpu.memory_space<vmem>>, vector<1x1x128xf32>,
    %c0_i32_49 = arith.constant 0 : i32
    %117 = arith.cmpi eq, %arg0, %c0_i32_49 : i32
    %118 = arith.extui %117 : i1 to i32
    %c0_i32_50 = arith.constant 0 : i32
    %119 = arith.cmpi ne, %118, %c0_i32_50 : i32
    scf.if %119 {
      %c0_51 = arith.constant 0 : index
      %c0_52 = arith.constant 0 : index
      %120 = vector.load %arg9[%c0_51, %c0_52] : memref<2x128xf32, #tpu.memory_space<vmem>>, vector<2x128xf32>
      %121 = arith.truncf %120 : vector<2x128xf32> to vector<2x128xbf16>
      %c0_53 = arith.constant 0 : index
      %c0_54 = arith.constant 0 : index
      %122 = vector.load %arg11[%c0_53, %c0_54] : memref<128x128xbf16, #tpu.memory_space<vmem>>, vector<128x128xbf16>
      %cst_55 = arith.constant dense<0.000000e+00> : vector<2x128xf32>
      %123 = tpu.matmul %121, %122, %cst_55 {dimension_numbers = #tpu.dot_dimension_numbers<[1], [0], [0], [1], [0, 0, 1, 1], [], []>} : vector<2x128xbf16>, vector<128x128xbf16>, vector<2x128xf32> -> vector<2x128xf32>
      %c0_56 = arith.constant 0 : index
      %c0_57 = arith.constant 0 : index
      %124 = vector.load %arg12[%c0_56, %c0_57] : memref<1x128xf32, #tpu.memory_space<vmem>>, vector<1x128xf32>
      %125 = vector.broadcast %124 : vector<1x128xf32> to vector<2x128xf32>
      %126 = arith.addf %123, %125 : vector<2x128xf32>
      %127 = math.tanh %126 : vector<2x128xf32>
      %128 = arith.truncf %127 : vector<2x128xf32> to vector<2x128xbf16>
      %c0_58 = arith.constant 0 : index
      %c0_59 = arith.constant 0 : index
      %129 = vector.load %arg13[%c0_58, %c0_59] : memref<128x128xbf16, #tpu.memory_space<vmem>>, vector<128x128xbf16>
      %cst_60 = arith.constant dense<0.000000e+00> : vector<2x128xf32>
      %130 = tpu.matmul %128, %129, %cst_60 {dimension_numbers = #tpu.dot_dimension_numbers<[1], [0], [0], [1], [0, 0, 1, 1], [], []>} : vector<2x128xbf16>, vector<128x128xbf16>, vector<2x128xf32> -> vector<2x128xf32>
      %c0_61 = arith.constant 0 : index
      %c0_62 = arith.constant 0 : index
      %131 = vector.load %arg14[%c0_61, %c0_62] : memref<1x128xf32, #tpu.memory_space<vmem>>, vector<1x128xf32>
      %132 = vector.broadcast %131 : vector<1x128xf32> to vector<2x128xf32>
      %133 = arith.addf %130, %132 : vector<2x128xf32>
      %c0_63 = arith.constant 0 : index
      %c0_64 = arith.constant 0 : index
      %c0_65 = arith.constant 0 : index
      %134 = vector.load %arg16[%c0_63, %c0_64, %c0_65] : memref<1x2x128xf32, #tpu.memory_space<vmem>>, vector<1x2x128xf32>
      %135 = vector.shape_cast %134 : vector<1x2x128xf32> to vector<2x128xf32>
      %136 = vector.shape_cast %133 : vector<2x128xf32> to vector<1x2x128xf32>
      tpu.vector_store %arg16[%c0_63, %c0_64, %c0_65], %136 {strides = array<i32>} : memref<1x2x128xf32, #tpu.memory_space<vmem>>, vector<1x2x128xf32>,
      %c0_66 = arith.constant 0 : index
      %c0_67 = arith.constant 0 : index
      %137 = vector.load %arg10[%c0_66, %c0_67] : memref<2x1xi32, #tpu.memory_space<vmem>>, vector<2x1xi32>
      %138 = tpu.iota {dimensions = array<i32: 1>} : vector<2x128xi32>
      %139 = vector.broadcast %137 : vector<2x1xi32> to vector<2x128xi32>
      %140 = arith.cmpi eq, %138, %139 : vector<2x128xi32>
      %141 = arith.extui %140 : vector<2x128xi1> to vector<2x128xi32>
      %142 = arith.sitofp %141 : vector<2x128xi32> to vector<2x128xf32>
      %cst_68 = arith.constant dense<0xFF800000> : vector<2xf32>
      %143 = vector.multi_reduction <maximumf>, %133, %cst_68 [1] : vector<2x128xf32> to vector<2xf32>
      %144 = vector.shape_cast %143 : vector<2xf32> to vector<2x1xf32>
      %145 = vector.broadcast %144 : vector<2x1xf32> to vector<2x128xf32>
      %146 = arith.subf %133, %145 : vector<2x128xf32>
      %147 = math.exp %146 : vector<2x128xf32>
      %cst_69 = arith.constant dense<0.000000e+00> : vector<2xf32>
      %148 = vector.multi_reduction <add>, %147, %cst_69 [1] : vector<2x128xf32> to vector<2xf32>
      %149 = vector.shape_cast %148 : vector<2xf32> to vector<2x1xf32>
      %150 = math.log %149 : vector<2x1xf32>
      %151 = arith.addf %144, %150 : vector<2x1xf32>
      %152 = arith.mulf %133, %142 : vector<2x128xf32>
      %cst_70 = arith.constant dense<0.000000e+00> : vector<2xf32>
      %153 = vector.multi_reduction <add>, %152, %cst_70 [1] : vector<2x128xf32> to vector<2xf32>
      %154 = vector.shape_cast %153 : vector<2xf32> to vector<2x1xf32>
      %155 = arith.subf %151, %154 : vector<2x1xf32>
      %cst_71 = arith.constant dense<0.000000e+00> : vector<1xf32>
      %156 = vector.multi_reduction <add>, %155, %cst_71 [0] : vector<2x1xf32> to vector<1xf32>
      %157 = vector.shape_cast %156 : vector<1xf32> to vector<1x1xf32>
      %c2_i32 = arith.constant 2 : i32
      %158 = vector.broadcast %c2_i32 : i32 to vector<1x128xi32>
      %159 = arith.cmpi eq, %100, %158 : vector<1x128xi32>
      %cst_72 = arith.constant 0.000000e+00 : f32
      %160 = vector.shape_cast %157 : vector<1x1xf32> to vector<1x1xf32>
      %161 = vector.broadcast %160 : vector<1x1xf32> to vector<1x128xf32>
      %162 = vector.broadcast %cst_72 : f32 to vector<1x128xf32>
      %163 = arith.select %159, %161, %162 : vector<1x128xi1>, vector<1x128xf32>
      %164 = arith.addf %113, %163 : vector<1x128xf32>
      %c0_73 = arith.constant 0 : index
      %c0_74 = arith.constant 0 : index
      %c0_75 = arith.constant 0 : index
      %165 = vector.load %arg17[%c0_73, %c0_74, %c0_75] : memref<1x1x128xf32, #tpu.memory_space<vmem>>, vector<1x1x128xf32>
      %166 = vector.shape_cast %165 : vector<1x1x128xf32> to vector<1x128xf32>
      %167 = vector.shape_cast %164 : vector<1x128xf32> to vector<1x1x128xf32>
      tpu.vector_store %arg17[%c0_73, %c0_74, %c0_75], %167 {strides = array<i32>} : memref<1x1x128xf32, #tpu.memory_space<vmem>>, vector<1x1x128xf32>,
    } else {
    }
    return
  }
  func.func @transform_0(%arg0: i32) -> (i32, i32, i32) {
    %c0_i32 = arith.constant 0 : i32
    %c0_i32_0 = arith.constant 0 : i32
    %c0_i32_1 = arith.constant 0 : i32
    return %arg0, %c0_i32, %c0_i32_0 : i32, i32, i32
  }
  func.func @transform_1(%arg0: i32) -> (i32, i32, i32) {
    %c0_i32 = arith.constant 0 : i32
    %c0_i32_0 = arith.constant 0 : i32
    %c0_i32_1 = arith.constant 0 : i32
    return %arg0, %c0_i32, %c0_i32_0 : i32, i32, i32
  }
  func.func @transform_2(%arg0: i32) -> (i32, i32, i32) {
    %c0_i32 = arith.constant 0 : i32
    %c0_i32_0 = arith.constant 0 : i32
    %c0_i32_1 = arith.constant 0 : i32
    return %arg0, %c0_i32, %c0_i32_0 : i32, i32, i32
  }
  func.func @transform_3(%arg0: i32) -> (i32, i32, i32) {
    %c0_i32 = arith.constant 0 : i32
    %c0_i32_0 = arith.constant 0 : i32
    %c0_i32_1 = arith.constant 0 : i32
    return %arg0, %c0_i32, %c0_i32_0 : i32, i32, i32
  }
  func.func @transform_4(%arg0: i32) -> (i32, i32, i32) {
    %c0_i32 = arith.constant 0 : i32
    %c0_i32_0 = arith.constant 0 : i32
    %c0_i32_1 = arith.constant 0 : i32
    return %arg0, %c0_i32, %c0_i32_0 : i32, i32, i32
  }
  func.func @transform_5(%arg0: i32) -> (i32, i32, i32) {
    %c0_i32 = arith.constant 0 : i32
    %c0_i32_0 = arith.constant 0 : i32
    %c0_i32_1 = arith.constant 0 : i32
    return %arg0, %c0_i32, %c0_i32_0 : i32, i32, i32
  }
  func.func @transform_6(%arg0: i32) -> (i32, i32, i32) {
    %c0_i32 = arith.constant 0 : i32
    %c0_i32_0 = arith.constant 0 : i32
    %c0_i32_1 = arith.constant 0 : i32
    return %arg0, %c0_i32, %c0_i32_0 : i32, i32, i32
  }
  func.func @transform_7(%arg0: i32) -> (i32, i32) {
    %c0_i32 = arith.constant 0 : i32
    %c0_i32_0 = arith.constant 0 : i32
    %c0_i32_1 = arith.constant 0 : i32
    return %c0_i32, %c0_i32_0 : i32, i32
  }
  func.func @transform_8(%arg0: i32) -> (i32, i32) {
    %c0_i32 = arith.constant 0 : i32
    %c0_i32_0 = arith.constant 0 : i32
    %c0_i32_1 = arith.constant 0 : i32
    return %c0_i32, %c0_i32_0 : i32, i32
  }
  func.func @transform_9(%arg0: i32) -> (i32, i32) {
    %c0_i32 = arith.constant 0 : i32
    %c0_i32_0 = arith.constant 0 : i32
    %c0_i32_1 = arith.constant 0 : i32
    return %c0_i32, %c0_i32_0 : i32, i32
  }
  func.func @transform_10(%arg0: i32) -> (i32, i32) {
    %c0_i32 = arith.constant 0 : i32
    %c0_i32_0 = arith.constant 0 : i32
    %c0_i32_1 = arith.constant 0 : i32
    return %c0_i32, %c0_i32_0 : i32, i32
  }
  func.func @transform_11(%arg0: i32) -> (i32, i32) {
    %c0_i32 = arith.constant 0 : i32
    %c0_i32_0 = arith.constant 0 : i32
    %c0_i32_1 = arith.constant 0 : i32
    return %c0_i32, %c0_i32_0 : i32, i32
  }
  func.func @transform_12(%arg0: i32) -> (i32, i32) {
    %c0_i32 = arith.constant 0 : i32
    %c0_i32_0 = arith.constant 0 : i32
    %c0_i32_1 = arith.constant 0 : i32
    return %c0_i32, %c0_i32_0 : i32, i32
  }
  func.func @transform_13(%arg0: i32) -> (i32, i32) {
    %c0_i32 = arith.constant 0 : i32
    %c0_i32_0 = arith.constant 0 : i32
    %c0_i32_1 = arith.constant 0 : i32
    return %c0_i32, %c0_i32_0 : i32, i32
  }
  func.func @transform_14(%arg0: i32) -> (i32, i32, i32) {
    %c0_i32 = arith.constant 0 : i32
    %c0_i32_0 = arith.constant 0 : i32
    %c0_i32_1 = arith.constant 0 : i32
    return %arg0, %c0_i32, %c0_i32_0 : i32, i32, i32
  }
  func.func @transform_15(%arg0: i32) -> (i32, i32, i32) {
    %c0_i32 = arith.constant 0 : i32
    %c0_i32_0 = arith.constant 0 : i32
    %c0_i32_1 = arith.constant 0 : i32
    return %arg0, %c0_i32, %c0_i32_0 : i32, i32, i32
  }
  func.func @transform_16(%arg0: i32) -> (i32, i32, i32) {
    %c0_i32 = arith.constant 0 : i32
    %c0_i32_0 = arith.constant 0 : i32
    %c0_i32_1 = arith.constant 0 : i32
    return %arg0, %c0_i32, %c0_i32_0 : i32, i32, i32
  }
}

</mosaic_0001>

<bundles_post_ra>
// kernel: univl_for_pretraining_forward.1
= control target key start
LH: loop header
LB: loop body
LE: loop exit
PB: predicated region body
PF: predicated region fallthrough
CT: control target
= control target key end

     0   :  { %s2440_s21 = smov 0   ;;  %s2946_s0 = inlined_call_operand.vmem [shape: f32[2,32,128], index: 0, kind: input, shape index: {}]   ;;  %s2947_s1 = inlined_call_operand.vmem [shape: s32[2,1,32], index: 1, kind: input, shape index: {}]   ;;  %s2948_s2 = inlined_call_operand.vmem [shape: bf16[2,128,128], index: 2, kind: input, shape index: {}]   ;;  %s2949_s3 = inlined_call_operand.vmem [shape: f32[2,1,128], index: 3, kind: input, shape index: {}]   ;;  %s2950_s4 = inlined_call_operand.vmem [shape: f32[2,1,128], index: 4, kind: input, shape index: {}]   ;;  %s2951_s5 = inlined_call_operand.vmem [shape: f32[2,1,128], index: 5, kind: input, shape index: {}]   ;;  %s2952_s6 = inlined_call_operand.vmem [shape: f32[2,1,512], index: 6, kind: input, shape index: {}]   ;;  %s2953_s7 = inlined_call_operand.vmem [shape: bf16[512,128], index: 7, kind: input, shape index: {}]   ;;  %s2954_s8 = inlined_call_operand.vmem [shape: f32[2,128], index: 8, kind: input, shape index: {}]   ;;  %s2955_s9 = inlined_call_operand.vmem [shape: s32[2,1], index: 9, kind: input, shape index: {}]   ;;  %s2956_s10 = inlined_call_operand.vmem [shape: bf16[128,128], index: 10, kind: input, shape index: {}]   ;;  %s2957_s11 = inlined_call_operand.vmem [shape: f32[1,128], index: 11, kind: input, shape index: {}]   ;;  %s2958_s12 = inlined_call_operand.vmem [shape: bf16[128,128], index: 12, kind: input, shape index: {}]   ;;  %s2959_s13 = inlined_call_operand.vmem [shape: f32[1,128], index: 13, kind: input, shape index: {}]   ;;  %s2960_s14 = inlined_call_operand.vmem [shape: f32[2,32,512], index: 14, kind: output, shape index: {0}]   ;;  %s2961_s15 = inlined_call_operand.vmem [shape: f32[2,2,128], index: 15, kind: output, shape index: {1}]   ;;  %s2962_s16 = inlined_call_operand.vmem [shape: f32[2,1,128], index: 16, kind: output, shape index: {2}]  }
   0x1   :  { %2964 = sst [smem:[#allocation3_spill]] %s2946_s0 }
   0x2 LB: > { %2965 = sst [smem:[#allocation2_spill]] %s2349_s21  ;;  %s2446_s22 = sadd.s32 4294967295, %s2349_s21   ;;  %s2349_s21 = sphi %s2440_s21, %s27_s21  }
   0x3   : > { %p1979_p0 = scmp.ge.s32.totalorder %s2349_s21, 1  ;;  %p518_p1 = scmp.lt.s32.totalorder %s2349_s21, 3 }
   0x5   : > { %p519_p2 = pnand %p1979_p0, %p518_p1 }
   0x6   : > { %p596_p3 = scmp.lt.s32.totalorder (!%p519_p2), %s2446_s22, 1  ;;  %s2966_s20 = sld [smem:[#allocation3_spill]] (!%p519_p2)  ;;  %v2232_v59 = vld [vmem:[%s2953_s7 + $0x40] sm:$0xff] (!%p519_p2)   ;;  %v2236_v63 = vld [vmem:[%s2953_s7 + $0x48] sm:$0xff] (!%p519_p2)   ;;  %vm1289_vm2 = vcmask (!%p519_p2), 261120  }
   0x7   : > { %522 = sbr.rel (%p519_p2) target bundleno = 1819 (0x71b), region = 76  ;;  %v2233_v60 = vld [vmem:[%s2953_s7 + $0xc0] sm:$0xff] (!%p519_p2)   ;;  %2086 = vmatprep.subr.bf16.mxu1 (!%p519_p2), %v2232_v59  ;;  %p2051_p4 = scmp.ne.s32.totalorder (!%p519_p2), %s2446_s22, 0 }
   0x8   : > { %v2234_v61 = vld [vmem:[%s2953_s7] sm:$0xff] (!%p519_p2)  }
   0x9   : > { %v2235_v62 = vld [vmem:[%s2953_s7 + $0x80] sm:$0xff] (!%p519_p2)   ;;  %2087 = vmatpush3.bf16.xpose.msra.mxu1 (!%p519_p2), %v2234_v61 }
   0xa   : > { %2088 = vmatprep.subr.bf16.mxu1 (!%p519_p2), %v2236_v63 }
   0xe   : > { %s2452_s23 = scalar_select %p596_p3, %s2446_s22, 1 }
  0x10   : > { %s2074_s24 = sshll.u32 %s2452_s23, 6  ;;  %s1987_s25 = sshll.u32 %s2452_s23, 1 }
  0x11   : > { %s608_s28 = scalar_lea.vmem %s2948_s2, %s2074_s24  ;;  %s2462_s0 = scalar_lea.vmem %s2961_s15, %s1987_s25 }
  0x12   : > { %v2224_v0 = vld [vmem:[%s608_s28] sm:$0xff]   ;;  %v2225_v1 = vld [vmem:[%s608_s28 + $0x8] sm:$0xff]   ;;  %s2073_s17 = sshll.u32 %s2452_s23, 5  ;;  %v2226_v2 = vld [vmem:[%s608_s28 + $0x10] sm:$0xff]   ;;  %s611_s26 = scalar_lea.vmem %s2949_s3, %s2452_s23 }
  0x13   : > { %2144 = vmatprep.subr.bf16.mxu0 %v2224_v0  ;;  %s600_s21 = scalar_lea.vmem %s2966_s20, %s2073_s17  ;;  %v2227_v3 = vld [vmem:[%s608_s28 + $0x18] sm:$0xff]   ;;  %v2228_v7 = vld [vmem:[%s608_s28 + $0x20] sm:$0xff]   ;;  %v2229_v8 = vld [vmem:[%s608_s28 + $0x28] sm:$0xff]   ;;  %s614_s18 = scalar_lea.vmem %s2950_s4, %s2452_s23 }
  0x14   : > { %2145 = vmatpush3.bf16.msra.mxu0 %v2224_v0  ;;  %v635_v4 = vld [vmem:[%s600_s21] sm:$0xff]  ;;  %v636_v5 = vld [vmem:[%s600_s21 + $0x8] sm:$0xff]  ;;  %v2230_v9 = vld [vmem:[%s608_s28 + $0x30] sm:$0xff]   ;;  %s617_s24 = scalar_lea.vmem %s2951_s5, %s2452_s23  ;;  %s1984_s25 = sshll.u32 %s2452_s23, 2 }
  0x15   : > { %2146 = vmatprep.subr.bf16.mxu0 %v2225_v1  ;;  %v639_v6 = vpack.c.bf16 %v636_v5, %v635_v4  ;;  %v2231_v10 = vld [vmem:[%s608_s28 + $0x38] sm:$0xff]   ;;  %v637_v11 = vld [vmem:[%s600_s21 + $0x10] sm:$0xff]  ;;  %v1988_v14 = vld [vmem:[%s611_s26] ss:$0 sm:$0xff]  ;;  %s621_s27 = scalar_lea.vmem %s2952_s6, %s1984_s25  ;;  %s2075_s28 = sshll.u32 %s2452_s23, 7 }
  0x16   : > { %v638_v12 = vld [vmem:[%s600_s21 + $0x18] sm:$0xff]  ;;  %v2237_v0 = vld [vmem:[%s2953_s7 + $0xc8] sm:$0xff]   ;;  %v2241_v4 = vld [vmem:[%s2953_s7 + $0xd0] sm:$0xff]   ;;  %s2592_s17 = scalar_lea.vmem %s2960_s14, %s2075_s28  ;;  %s603_s20 = scalar_lea.vmem %s2947_s1, %s2452_s23 }
  0x17   : > { %2160 = vmatprep.mubr.bf16.mxu0 %v639_v6  ;;  %v640_v13 = vpack.c.bf16 %v638_v12, %v637_v11  ;;  %v2242_v5 = vld [vmem:[%s2953_s7 + $0x10] sm:$0xff]   ;;  %v2248_v11 = vld [vmem:[%s2953_s7 + $0x60] sm:$0xff]   ;;  %s2848_s26 = scalar_lea.vmem %s2962_s16, %s2452_s23 }
  0x18   : > { %2147 = vmatpush3.bf16.msra.mxu0 %v2225_v1  ;;  %v2238_v1 = vld [vmem:[%s2953_s7 + $0x8] sm:$0xff]   ;;  %v2243_v6 = vld [vmem:[%s2953_s7 + $0x90] sm:$0xff]   ;;  %v2249_v12 = vld [vmem:[%s2953_s7 + $0xe0] sm:$0xff]  }
  0x19   : > { %2148 = vmatprep.subr.bf16.mxu0 %v2226_v2  ;;  %2089 = vmatpush3.bf16.xpose.msra.mxu1 %v2238_v1  ;;  %v1998_v63 = vld [vmem:[%s617_s24] ss:$0 sm:$0xff] }
  0x1c   : > { %2149 = vmatpush3.bf16.msra.mxu0 %v2226_v2  ;;  %v2239_v2 = vld [vmem:[%s2953_s7 + $0x88] sm:$0xff]  }
  0x1d   : > { %2150 = vmatprep.subr.bf16.mxu0 %v2227_v3 }
  0x20   : > { %2151 = vmatpush3.bf16.msra.mxu0 %v2227_v3  ;;  %v2240_v3 = vld [vmem:[%s2953_s7 + $0x50] sm:$0xff]  }
  0x21   : > { %2152 = vmatprep.subr.bf16.mxu0 %v2228_v7  ;;  %2090 = vmatprep.subr.bf16.mxu1 %v2240_v3 }
  0x22   : > { %2091 = vmatpush3.bf16.xpose.msra.mxu1 %v2242_v5 }
  0x24   : > { %2153 = vmatpush3.bf16.msra.mxu0 %v2228_v7  ;;  %v2244_v7 = vld [vmem:[%s2953_s7 + $0x58] sm:$0xff]  }
  0x25   : > { %2154 = vmatprep.subr.bf16.mxu0 %v2229_v8  ;;  %2092 = vmatprep.subr.bf16.mxu1 %v2244_v7 }
  0x28   : > { %2155 = vmatpush3.bf16.msra.mxu0 %v2229_v8  ;;  %v2245_v8 = vld [vmem:[%s2953_s7 + $0xd8] sm:$0xff]  }
  0x29   : > { %2156 = vmatprep.subr.bf16.mxu0 %v2230_v9 }
  0x2c   : > { %2157 = vmatpush3.bf16.msra.mxu0 %v2230_v9  ;;  %v2246_v9 = vld [vmem:[%s2953_s7 + $0x18] sm:$0xff]  }
  0x2d   : > { %2158 = vmatprep.subr.bf16.mxu0 %v2231_v10  ;;  %2093 = vmatpush3.bf16.xpose.msra.mxu1 %v2246_v9 }
  0x2e   : > { %2094 = vmatprep.subr.bf16.mxu1 %v2248_v11  ;;  %v932_v11 = vlaneseq }
  0x30   : > { %2159 = vmatpush3.bf16.msra.mxu0 %v2231_v10  ;;  %v2247_v10 = vld [vmem:[%s2953_s7 + $0x98] sm:$0xff]  }
  0x31   : > { %2106 = vmatprep.subr.bf16.mxu0 %v2233_v60 }
  0x33   : > { %2161 = vmatmul.mubr.bf16.vlgmr.msra.gmra.mrb[0].mxu0 %v640_v13  ;;  %v2250_v13 = vld [vmem:[%s2953_s7 + $0x20] sm:$0xff]  }
  0x35   : > { %2095 = vmatpush3.bf16.xpose.msra.mxu1 %v2250_v13 }
  0x39   : > { %2107 = vmatpush3.bf16.xpose.msra.mxu0 %v2235_v62 }
  0x3a   : > { %2108 = vmatprep.subr.bf16.mxu0 %v2237_v0 }
  0x41   : > { %2109 = vmatpush3.bf16.xpose.msra.mxu0 %v2239_v2 }
  0x42   : > { %2110 = vmatprep.subr.bf16.mxu0 %v2241_v4 }
  0x49   : > { %2111 = vmatpush3.bf16.xpose.msra.mxu0 %v2243_v6 }
  0x4a   : > { %2112 = vmatprep.subr.bf16.mxu0 %v2245_v8 }
  0x51   : > { %2113 = vmatpush3.bf16.xpose.msra.mxu0 %v2247_v10 }
  0x52   : > { %2114 = vmatprep.subr.bf16.mxu0 %v2249_v12  ;;  %v2577_v12 = vshrl.u32 %v932_v11, 7 }
  0x54   : > { %v934_v13 = vsub.s32 0, %v2577_v12 }
 0x106   : > { %v2162_v15 = vpop.f32.mrb[0].mxu0 }
 0x107   : > { %v755_v16 = vadd.f32 %v2162_v15, %v1988_v14  ;;  %v746_v17 = vpop.f32.mrb[1].mxu0 }
 0x108   : > { %v747_v18 = vadd.f32 %v1988_v14, %v746_v17  ;;  %v2163_v19 = vpop.f32.mrb[2].mxu0 }
 0x109   : > { %v767_v20 = vmul.f32 0.044715, %v755_v16  ;;  %v758_v21 = vadd.f32 %v2163_v19, %v1988_v14  ;;  %v749_v22 = vpop.f32.mrb[3].mxu0  ;;  %v763_v45 = vmul.f32 0.5, %v755_v16 }
 0x10a   : > { %v765_v23 = vmul.f32 0.044715, %v747_v18  ;;  %v750_v24 = vadd.f32 %v1988_v14, %v749_v22  ;;  %v761_v48 = vmul.f32 0.5, %v747_v18  ;;  %v2251_v14 = vld [vmem:[%s2953_s7 + $0xa0] sm:$0xff]  }
 0x10b   : > { %v768_v25 = vmul.f32 0.044715, %v758_v21  ;;  %v771_v26 = vmul.f32 %v767_v20, %v755_v16  ;;  %v764_v55 = vmul.f32 0.5, %v758_v21  ;;  %2115 = vmatpush3.bf16.xpose.msra.mxu0 %v2251_v14  ;;  %v942_v14 = vsub.s32 2, %v2577_v12 }
 0x10c   : > { %v766_v27 = vmul.f32 0.044715, %v750_v24  ;;  %v769_v28 = vmul.f32 %v765_v23, %v747_v18  ;;  %v762_v56 = vmul.f32 0.5, %v750_v24 }
 0x10d   : > { %v775_v29 = vmul.f32 %v771_v26, %v755_v16  ;;  %v772_v30 = vmul.f32 %v768_v25, %v758_v21 }
 0x10e   : > { %v773_v31 = vmul.f32 %v769_v28, %v747_v18  ;;  %v770_v32 = vmul.f32 %v766_v27, %v750_v24 }
 0x10f   : > { %v779_v33 = vadd.f32 %v775_v29, %v755_v16  ;;  %v776_v34 = vmul.f32 %v772_v30, %v758_v21 }
 0x110   : > { %v777_v35 = vadd.f32 %v773_v31, %v747_v18  ;;  %v774_v36 = vmul.f32 %v770_v32, %v750_v24  ;;  %v2252_v31 = vld [vmem:[%s2953_s7 + $0x68] sm:$0xff]  }
 0x111   : > { %v783_v37 = vmul.f32 0.7978846, %v779_v33  ;;  %v780_v38 = vadd.f32 %v776_v34, %v758_v21  ;;  %v2253_v32 = vld [vmem:[%s2953_s7 + $0xe8] sm:$0xff]   ;;  %2096 = vmatprep.subr.bf16.mxu1 %v2252_v31 }
 0x112   : > { %v781_v39 = vmul.f32 0.7978846, %v777_v35  ;;  %v778_v40 = vadd.f32 %v774_v36, %v750_v24  ;;  %v2254_v33 = vld [vmem:[%s2953_s7 + $0x28] sm:$0xff]   ;;  %2116 = vmatprep.subr.bf16.mxu0 %v2253_v32  ;;  %v2256_v35 = vld [vmem:[%s2953_s7 + $0x70] sm:$0xff]  }
 0x113   : > { %2264 = vtanh.f32 %v783_v37  ;;  %v784_v41 = vmul.f32 0.7978846, %v780_v38  ;;  %v2255_v34 = vld [vmem:[%s2953_s7 + $0xa8] sm:$0xff]   ;;  %2097 = vmatpush3.bf16.xpose.msra.mxu1 %v2254_v33  ;;  %v2257_v36 = vld [vmem:[%s2953_s7 + $0xf0] sm:$0xff]  }
 0x114   : > { %2266 = vtanh.f32 %v781_v39  ;;  %v782_v42 = vmul.f32 0.7978846, %v778_v40  ;;  %2117 = vmatpush3.bf16.xpose.msra.mxu0 %v2255_v34  ;;  %v2258_v37 = vld [vmem:[%s2953_s7 + $0x30] sm:$0xff]   ;;  %2098 = vmatprep.subr.bf16.mxu1 %v2256_v35  ;;  %v2260_v39 = vld [vmem:[%s2953_s7 + $0x78] sm:$0xff]  }
 0x115   : > { %2268 = vtanh.f32 %v784_v41  ;;  %v2259_v38 = vld [vmem:[%s2953_s7 + $0xb0] sm:$0xff]   ;;  %2118 = vmatprep.subr.bf16.mxu0 %v2257_v36  ;;  %v2261_v40 = vld [vmem:[%s2953_s7 + $0xf8] sm:$0xff]  }
 0x116   : > { %2270 = vtanh.f32 %v782_v42  ;;  %v2262_v41 = vld [vmem:[%s2953_s7 + $0x38] sm:$0xff]  }
 0x117   : > { %v2263_v42 = vld [vmem:[%s2953_s7 + $0xb8] sm:$0xff]  }
 0x11b   : > { %2099 = vmatpush3.bf16.xpose.msra.mxu1 %v2258_v37 }
 0x11c   : > { %2119 = vmatpush3.bf16.xpose.msra.mxu0 %v2259_v38  ;;  %2100 = vmatprep.subr.bf16.mxu1 %v2260_v39  ;;  %v1266_v39 = vld [vmem:[%s603_s20] sm:$0x1] }
 0x11d   : > { %v2265_v43 = vpop.eup %2264  ;;  %2120 = vmatprep.subr.bf16.mxu0 %v2261_v40 }
 0x11e   : > { %v2267_v44 = vpop.eup %2266  ;;  %v791_v46 = vadd.f32 1.0, %v2265_v43 }
 0x11f   : > { %v2269_v47 = vpop.eup %2268  ;;  %v789_v49 = vadd.f32 1.0, %v2267_v44 }
 0x120   : > { %v2271_v50 = vpop.eup %2270  ;;  %v795_v51 = vmul.f32 %v791_v46, %v763_v45  ;;  %v792_v52 = vadd.f32 1.0, %v2269_v47 }
 0x121   : > { %v793_v53 = vmul.f32 %v789_v49, %v761_v48  ;;  %v790_v54 = vadd.f32 1.0, %v2271_v50 }
 0x122   : > { %801 = vadd.xlane.f32.xlu1 %v795_v51  ;;  %v796_v57 = vmul.f32 %v792_v52, %v764_v55 }
 0x123   : > { %797 = vadd.xlane.f32.xlu0 %v793_v53  ;;  %v794_v58 = vmul.f32 %v790_v54, %v762_v56  ;;  %2101 = vmatpush3.bf16.xpose.msra.mxu1 %v2262_v41 }
 0x124   : > { %2121 = vmatpush3.bf16.xpose.msra.mxu0 %v2263_v42 }
 0x126   : > { %803 = vadd.xlane.f32.xlu1 %v796_v57 }
 0x127   : > { %799 = vadd.xlane.f32.xlu0 %v794_v58 }
 0x1af   : > { %v802_v15 = vpop.xlane.xlu1 %801 }
 0x1b0   : > { %v798_v16 = vpop.xlane.xlu0 %797  ;;  %v808_v17 = vmul.f32 0.0078125, %v802_v15  ;;  %v930_v15 = vld [vmem:[%s621_s27] sm:$0xf] }
 0x1b1   : > { %v806_v18 = vmul.f32 0.0078125, %v798_v16  ;;  %v938_v16 = vsub.s32 1, %v2577_v12 }
 0x1b2   : > { %v812_v22 = vsub.f32 %v795_v51, %v808_v17  ;;  %v946_v17 = vsub.s32 3, %v2577_v12 }
 0x1b3   : > { %v810_v19 = vsub.f32 %v793_v53, %v806_v18  ;;  %v804_v20 = vpop.xlane.xlu1 %803  ;;  %v935_v18 = vrot.slane %v930_v15, %v934_v13 }
 0x1b4   : > { %v800_v21 = vpop.xlane.xlu0 %799  ;;  %v809_v23 = vmul.f32 0.0078125, %v804_v20  ;;  %v816_v28 = vmul.f32 %v812_v22, %v812_v22  ;;  %v939_v20 = vrot.slane %v930_v15, %v938_v16 }
 0x1b5   : > { %v807_v24 = vmul.f32 0.0078125, %v800_v21  ;;  %v814_v25 = vmul.f32 %v810_v19, %v810_v19  ;;  %v947_v21 = vrot.slane %v930_v15, %v946_v17 }
 0x1b6   : > { %v813_v27 = vsub.f32 %v796_v57, %v809_v23  ;;  %v1997_v57 = vld [vmem:[%s614_s18] ss:$0 sm:$0xff] }
 0x1b7   : > { %v811_v26 = vsub.f32 %v794_v58, %v807_v24  ;;  %818 = vadd.xlane.f32.xlu0 %v814_v25 }
 0x1b8   : > { %v817_v30 = vmul.f32 %v813_v27, %v813_v27 }
 0x1b9   : > { %v815_v29 = vmul.f32 %v811_v26, %v811_v26 }
 0x1bb   : > { %822 = vadd.xlane.f32.xlu0 %v816_v28  ;;  %820 = vadd.xlane.f32.xlu1 %v815_v29 }
 0x1bf   : > { %824 = vadd.xlane.f32.xlu1 %v817_v30 }
 0x244   : > { %v819_v43 = vpop.xlane.xlu0 %818 }
 0x245   : > { %v826_v44 = vmul.f32 0.0078125, %v819_v43 }
 0x247   : > { %v830_v45 = vadd.f32 1e-12, %v826_v44 }
 0x248   : > { %v821_v46 = vpop.xlane.xlu1 %820  ;;  %v823_v47 = vpop.xlane.xlu0 %822 }
 0x249   : > { %2272 = vrsqrt.f32 %v830_v45  ;;  %v827_v48 = vmul.f32 0.0078125, %v821_v46  ;;  %v828_v49 = vmul.f32 0.0078125, %v823_v47  ;;  %v1267_v46 = vcvt.s32.f32 %v1266_v39 }
 0x24a   : > { %v2637_v47 = vand.u32 127, %v932_v11 }
 0x24b   : > { %v831_v50 = vadd.f32 1e-12, %v827_v48  ;;  %v832_v51 = vadd.f32 1e-12, %v828_v49 }
 0x24c   : > { %v825_v52 = vpop.xlane.xlu1 %824  ;;  %vm1275_vm0 = vcmp.eq.s32.totalorder %v2577_v12, %v2637_v47 }
 0x24d   : > { %2274 = vrsqrt.f32 %v831_v50  ;;  %v829_v53 = vmul.f32 0.0078125, %v825_v52 }
 0x24e   : > { %2276 = vrsqrt.f32 %v832_v51 }
 0x24f   : > { %v833_v54 = vadd.f32 1e-12, %v829_v53 }
 0x251   : > { %2278 = vrsqrt.f32 %v833_v54 }
 0x253   : > { %v2273_v55 = vpop.eup %2272 }
 0x254   : > { %v838_v56 = vmul.f32 %v2273_v55, %v810_v19  ;;  %v943_v19 = vrot.slane %v930_v15, %v942_v14 }
 0x256   : > { %v849_v61 = vmul.f32 %v1997_v57, %v838_v56 }
 0x257   : > { %v2275_v58 = vpop.eup %2274 }
 0x258   : > { %v2277_v59 = vpop.eup %2276  ;;  %v839_v60 = vmul.f32 %v2275_v58, %v811_v26  ;;  %v860_v3 = vadd.f32 %v1998_v63, %v849_v61  ;;  %v1270_v61 = vadd.s32 8, %v2577_v12 }
 0x259   : > { %v840_v62 = vmul.f32 %v2277_v59, %v812_v22 }
 0x25a   : > { %v850_v0 = vmul.f32 %v1997_v57, %v839_v60  ;;  %vm1276_vm1 = vcmp.eq.s32.totalorder %v1270_v61, %v2637_v47 }
 0x25b   : > { %v2279_v1 = vpop.eup %2278  ;;  %v851_v5 = vmul.f32 %v1997_v57, %v840_v62 }
 0x25c   : > { %v841_v2 = vmul.f32 %v2279_v1, %v813_v27  ;;  %v861_v4 = vadd.f32 %v1998_v63, %v850_v0  ;;  %v1283_v1 = vrot.slane %v1267_v46, %v934_v13 }
 0x25d   : > { %v862_v8 = vadd.f32 %v1998_v63, %v851_v5  ;;  %v1272_v5 = vadd.s32 24, %v2577_v12 }
 0x25e   : > { %v864_v6 = vpack.c.bf16 %v861_v4, %v860_v3  ;;  %v852_v7 = vmul.f32 %v1997_v57, %v841_v2  ;;  %v1271_v2 = vadd.s32 16, %v2577_v12 }
 0x25f   : > { %vm1278_vm4 = vcmp.eq.s32.totalorder %v1272_v5, %v2637_v47 }
 0x260   : > { %2102 = vmatprep.mubr.bf16.mxu1 %v864_v6  ;;  %2122 = vmatprep.mubr.bf16.mxu0 %v864_v6  ;;  %v863_v9 = vadd.f32 %v1998_v63, %v852_v7  ;;  %vm1277_vm3 = vcmp.eq.s32.totalorder %v1271_v2, %v2637_v47  ;;  %v1288_v12 = vsel %vm1278_vm4, %v1283_v1, 0.0 }
 0x261   : > { %2103 = vmatmul.mubr.bf16.vlgmr.msra.gmra.mrb[0].mxu1 %v864_v6  ;;  %2123 = vmatmul.mubr.bf16.vlgmr.msra.gmra.mrb[4].mxu0 %v864_v6  ;;  %v1287_v13 = vsel %vm1277_vm3, %v1283_v1, 0.0  ;;  %v1299_v16 = vsel %vm1289_vm2, %v1288_v12, 0.0 }
 0x262   : > { %v865_v10 = vpack.c.bf16 %v863_v9, %v862_v8  ;;  %v1285_v8 = vsel %vm1275_vm0, %v1283_v1, 0.0  ;;  %v1296_v15 = vsel %vm1289_vm2, %v1287_v13, 0.0  ;;  %v2739_v13 = vadd.s32 384, %v2637_v47 }
 0x263   : > { %v1290_v11 = vsel %vm1289_vm2, %v1285_v8, 0.0  ;;  %v2734_v8 = vadd.s32 256, %v2637_v47 }
 0x264   : > { %2104 = vmatprep.mubr.bf16.mxu1 %v865_v10  ;;  %2124 = vmatprep.mubr.bf16.mxu0 %v865_v10 }
 0x269   : > { %2105 = vmatmul.mubr.bf16.gmra.mrb[4].mxu1 %v865_v10  ;;  %2125 = vmatmul.mubr.bf16.gmra.mrb[8].mxu0 %v865_v10  ;;  %v1286_v10 = vsel %vm1276_vm1, %v1283_v1, 0.0 }
 0x26a   : > { %v1293_v14 = vsel %vm1289_vm2, %v1286_v10, 0.0 }
 0x334   : > { %v1178_v22 = vpop.f32.mrb[0].mxu1  ;;  %v1231_v23 = vpop.f32.mrb[4].mxu0 }
 0x335   : > { %v2594_v24 = vadd.f32 %v1178_v22, %v935_v18  ;;  %v2596_v25 = vadd.f32 %v1231_v23, %v943_v19  ;;  %v1180_v26 = vpop.f32.mrb[1].mxu1  ;;  %v1233_v27 = vpop.f32.mrb[5].mxu0 }
 0x336   : > { %v2598_v28 = vadd.f32 %v1180_v26, %v939_v20  ;;  %v2600_v29 = vadd.f32 %v1233_v27, %v947_v21  ;;  %v1182_v30 = vpop.f32.mrb[2].mxu1  ;;  %v1235_v31 = vpop.f32.mrb[6].mxu0 }
 0x337   : > { %1250 = vst [vmem:[%s2592_s17] sm:$0xff] %v2594_v24  ;;  %1252 = vst [vmem:[%s2592_s17 + $0x10] sm:$0xff] %v2596_v25  ;;  %v2610_v32 = vadd.f32 %v1182_v30, %v935_v18  ;;  %v2612_v33 = vadd.f32 %v1235_v31, %v943_v19  ;;  %v1184_v34 = vpop.f32.mrb[3].mxu1  ;;  %v1237_v35 = vpop.f32.mrb[7].mxu0 }
 0x338   : > { %1251 = vst [vmem:[%s2592_s17 + $0x8] sm:$0xff] %v2598_v28  ;;  %1253 = vst [vmem:[%s2592_s17 + $0x18] sm:$0xff] %v2600_v29  ;;  %v2618_v36 = vadd.f32 %v1184_v34, %v939_v20  ;;  %v2620_v37 = vadd.f32 %v1237_v35, %v947_v21  ;;  %v1361_v38 = vmax.f32 %v2594_v24, %v2598_v28 }
 0x339   : > { %1254 = vst [vmem:[%s2592_s17 + $0x20] sm:$0xff] %v2610_v32  ;;  %1256 = vst [vmem:[%s2592_s17 + $0x30] sm:$0xff] %v2612_v33 }
 0x33a   : > { %1255 = vst [vmem:[%s2592_s17 + $0x28] sm:$0xff] %v2618_v36  ;;  %1257 = vst [vmem:[%s2592_s17 + $0x38] sm:$0xff] %v2620_v37  ;;  %v1362_v40 = vmax.f32 %v1361_v38, %v2596_v25  ;;  %v1366_v41 = vmax.f32 %v2610_v32, %v2618_v36 }
 0x33c   : > { %v1188_v42 = vpop.f32.mrb[4].mxu1  ;;  %v1241_v43 = vpop.f32.mrb[8].mxu0  ;;  %v1363_v44 = vmax.f32 %v1362_v40, %v2600_v29  ;;  %v1367_v45 = vmax.f32 %v1366_v41, %v2612_v33 }
 0x33d   : > { %v2639_v48 = vadd.f32 %v1188_v42, %v935_v18  ;;  %v2641_v49 = vadd.f32 %v1241_v43, %v943_v19  ;;  %v1190_v50 = vpop.f32.mrb[5].mxu1  ;;  %v1243_v51 = vpop.f32.mrb[9].mxu0 }
 0x33e   : > { %v2643_v52 = vadd.f32 %v1190_v50, %v939_v20  ;;  %v2645_v53 = vadd.f32 %v1243_v51, %v947_v21  ;;  %1364 = vmax.xlane.f32.xlu0 %v1363_v44  ;;  %v1192_v54 = vpop.f32.mrb[6].mxu1  ;;  %v1245_v55 = vpop.f32.mrb[10].mxu0  ;;  %v1368_v56 = vmax.f32 %v1367_v45, %v2620_v37 }
 0x33f   : > { %1258 = vst [vmem:[%s2592_s17 + $0x40] sm:$0xff] %v2639_v48  ;;  %1260 = vst [vmem:[%s2592_s17 + $0x50] sm:$0xff] %v2641_v49  ;;  %v2652_v57 = vadd.f32 %v1192_v54, %v935_v18  ;;  %v2654_v58 = vadd.f32 %v1245_v55, %v943_v19  ;;  %v1194_v59 = vpop.f32.mrb[7].mxu1  ;;  %v1247_v60 = vpop.f32.mrb[11].mxu0  ;;  %v2723_v54 = vadd.s32 128, %v2637_v47 }
 0x340   : > { %1259 = vst [vmem:[%s2592_s17 + $0x48] sm:$0xff] %v2643_v52  ;;  %1261 = vst [vmem:[%s2592_s17 + $0x58] sm:$0xff] %v2645_v53  ;;  %v2661_v62 = vadd.f32 %v1194_v59, %v939_v20  ;;  %v2663_v63 = vadd.f32 %v1247_v60, %v947_v21  ;;  %1369 = vmax.xlane.f32.xlu1 %v1368_v56  ;;  %v1371_v0 = vmax.f32 %v2639_v48, %v2643_v52 }
 0x341   : > { %1262 = vst [vmem:[%s2592_s17 + $0x60] sm:$0xff] %v2652_v57  ;;  %1264 = vst [vmem:[%s2592_s17 + $0x70] sm:$0xff] %v2654_v58 }
 0x342   : > { %1263 = vst [vmem:[%s2592_s17 + $0x68] sm:$0xff] %v2661_v62  ;;  %1265 = vst [vmem:[%s2592_s17 + $0x78] sm:$0xff] %v2663_v63  ;;  %v1372_v3 = vmax.f32 %v1371_v0, %v2641_v49  ;;  %v1376_v4 = vmax.f32 %v2652_v57, %v2661_v62 }
 0x344   : > { %v1373_v6 = vmax.f32 %v1372_v3, %v2645_v53  ;;  %v1377_v7 = vmax.f32 %v1376_v4, %v2654_v58 }
 0x346   : > { %1374 = vmax.xlane.f32.xlu0 %v1373_v6  ;;  %v1378_v9 = vmax.f32 %v1377_v7, %v2663_v63 }
 0x348   : > { %1379 = vmax.xlane.f32.xlu1 %v1378_v9 }
 0x34a   : > { %1291 = vadd.xlane.f32.xlu0 %v1290_v11 }
 0x34c   : > { %1294 = vadd.xlane.f32.xlu1 %v1293_v14 }
 0x34e   : > { %1297 = vadd.xlane.f32.xlu0 %v1296_v15 }
 0x350   : > { %1300 = vadd.xlane.f32.xlu1 %v1299_v16 }
 0x3cb   : > { %v2690_v17 = vpop.xlane.xlu0 %1364 }
 0x3cc   : > { %v1381_v18 = vsub.f32 %v2594_v24, %v2690_v17  ;;  %v1382_v19 = vsub.f32 %v2598_v28, %v2690_v17  ;;  %v1383_v20 = vsub.f32 %v2596_v25, %v2690_v17  ;;  %v1384_v21 = vsub.f32 %v2600_v29, %v2690_v17 }
 0x3cd   : > { %v2700_v22 = vpop.xlane.xlu1 %1369 }
 0x3ce   : > { %v1397_v23 = vmul.f32 1.442695, %v1381_v18  ;;  %v1399_v26 = vmul.f32 1.442695, %v1382_v19  ;;  %v1401_v27 = vmul.f32 1.442695, %v1383_v20  ;;  %v1385_v30 = vsub.f32 %v2610_v32, %v2700_v22 }
 0x3cf   : > { %v1403_v31 = vmul.f32 1.442695, %v1384_v21  ;;  %v1386_v34 = vsub.f32 %v2618_v36, %v2700_v22  ;;  %v1387_v35 = vsub.f32 %v2612_v33, %v2700_v22  ;;  %v1388_v38 = vsub.f32 %v2620_v37, %v2700_v22 }
 0x3d0   : > { %2280 = vpow2.f32 %v1397_v23  ;;  %v1405_v39 = vmul.f32 1.442695, %v1385_v30 }
 0x3d1   : > { %2282 = vpow2.f32 %v1399_v26  ;;  %v1407_v40 = vmul.f32 1.442695, %v1386_v34  ;;  %v1409_v41 = vmul.f32 1.442695, %v1387_v35  ;;  %v1411_v42 = vmul.f32 1.442695, %v1388_v38 }
 0x3d2   : > { %2284 = vpow2.f32 %v1401_v27  ;;  %v2351_v38 = vmov 0.0  }
 0x3d3   : > { %2286 = vpow2.f32 %v1403_v31  ;;  %v2710_v43 = vpop.xlane.xlu0 %1374 }
 0x3d4   : > { %2288 = vpow2.f32 %v1405_v39  ;;  %v1389_v44 = vsub.f32 %v2639_v48, %v2710_v43  ;;  %v1390_v45 = vsub.f32 %v2643_v52, %v2710_v43  ;;  %v1391_v46 = vsub.f32 %v2641_v49, %v2710_v43 }
 0x3d5   : > { %2290 = vpow2.f32 %v1407_v40  ;;  %v1392_v50 = vsub.f32 %v2645_v53, %v2710_v43  ;;  %v2720_v51 = vpop.xlane.xlu1 %1379 }
 0x3d6   : > { %2292 = vpow2.f32 %v1409_v41  ;;  %v1413_v55 = vmul.f32 1.442695, %v1389_v44  ;;  %v1415_v56 = vmul.f32 1.442695, %v1390_v45  ;;  %v1417_v59 = vmul.f32 1.442695, %v1391_v46 }
 0x3d7   : > { %2294 = vpow2.f32 %v1411_v42  ;;  %v1419_v60 = vmul.f32 1.442695, %v1392_v50  ;;  %v1393_v61 = vsub.f32 %v2652_v57, %v2720_v51  ;;  %v1394_v0 = vsub.f32 %v2661_v62, %v2720_v51  ;;  %v1292_v1 = vpop.xlane.xlu0 %1291 }
 0x3d8   : > { %2296 = vpow2.f32 %v1413_v55  ;;  %v1395_v2 = vsub.f32 %v2654_v58, %v2720_v51  ;;  %v1396_v3 = vsub.f32 %v2663_v63, %v2720_v51  ;;  %v2204_v4 = vtrunc.f32 %v1292_v1 }
 0x3d9   : > { %2298 = vpow2.f32 %v1415_v56  ;;  %v1421_v5 = vmul.f32 1.442695, %v1393_v61  ;;  %v1423_v6 = vmul.f32 1.442695, %v1394_v0  ;;  %v1295_v7 = vpop.xlane.xlu1 %1294 }
 0x3da   : > { %v2281_v9 = vpop.eup %2280  ;;  %2300 = vpow2.f32 %v1417_v59  ;;  %v1425_v10 = vmul.f32 1.442695, %v1395_v2  ;;  %v2736_v11 = vcvt.f32.s32 %v2204_v4  ;;  %v1427_v12 = vmul.f32 1.442695, %v1396_v3 }
 0x3db   : > { %v2283_v14 = vpop.eup %2282  ;;  %2302 = vpow2.f32 %v1419_v60  ;;  %v2206_v15 = vtrunc.f32 %v1295_v7  ;;  %v1298_v16 = vpop.xlane.xlu0 %1297 }
 0x3dc   : > { %v2285_v18 = vpop.eup %2284  ;;  %2304 = vpow2.f32 %v1421_v5  ;;  %v2208_v19 = vtrunc.f32 %v1298_v16  ;;  %v1429_v20 = vadd.f32 %v2283_v14, %v2281_v9  ;;  %vm1313_vm5 = vcmp.eq.s32.totalorder %v2637_v47, %v2736_v11 }
 0x3dd   : > { %v2287_v21 = vpop.eup %2286  ;;  %2306 = vpow2.f32 %v1423_v6  ;;  %v1301_v23 = vpop.xlane.xlu1 %1300  ;;  %vm1314_vm6 = vcmp.eq.s32.totalorder %v2723_v54, %v2736_v11  ;;  %vm1315_vm7 = vcmp.eq.s32.totalorder %v2734_v8, %v2736_v11  ;;  %v2747_v27 = vcvt.f32.s32 %v2206_v15 }
 0x3de   : > { %v2289_v26 = vpop.eup %2288  ;;  %2308 = vpow2.f32 %v1425_v10  ;;  %v2210_v30 = vtrunc.f32 %v1301_v23  ;;  %v1430_v31 = vadd.f32 %v2285_v18, %v1429_v20  ;;  %v2749_v35 = vcvt.f32.s32 %v2208_v19 }
 0x3df   : > { %v2291_v34 = vpop.eup %2290  ;;  %vm1316_vm8 = vcmp.eq.s32.totalorder %v2739_v13, %v2736_v11  ;;  %v2031_v39 = vsel %vm1313_vm5, 1.0, %v2351_v38  ;;  %v2032_v40 = vsel %vm1314_vm6, 1.0, %v2351_v38  ;;  %2310 = vpow2.f32 %v1427_v12 }
 0x3e0   : > { %v2293_v41 = vpop.eup %2292  ;;  %v1431_v42 = vadd.f32 %v2287_v21, %v1430_v31  ;;  %v1434_v44 = vadd.f32 %v2291_v34, %v2289_v26  ;;  %v2033_v45 = vsel %vm1315_vm7, 1.0, %v2351_v38  ;;  %v2759_v50 = vcvt.f32.s32 %v2210_v30 }
 0x3e1   : > { %v2295_v46 = vpop.eup %2294  ;;  %v2034_v55 = vsel %vm1316_vm8, 1.0, %v2351_v38  ;;  %v1461_v56 = vmul.f32 %v2031_v39, %v2594_v24  ;;  %v1462_v59 = vmul.f32 %v2032_v40, %v2598_v28  ;;  %v1463_v0 = vmul.f32 %v2033_v45, %v2596_v25 }
 0x3e2   : > { %v2297_v60 = vpop.eup %2296  ;;  %1432 = vadd.xlane.f32.xlu0 %v1431_v42  ;;  %v1435_v61 = vadd.f32 %v2293_v41, %v1434_v44  ;;  %vm1317_vm9 = vcmp.eq.s32.totalorder %v2637_v47, %v2747_v27  ;;  %vm1318_vm10 = vcmp.eq.s32.totalorder %v2723_v54, %v2747_v27  ;;  %vm1319_vm11 = vcmp.eq.s32.totalorder %v2734_v8, %v2747_v27 }
 0x3e3   : > { %v2299_v1 = vpop.eup %2298  ;;  %v1477_v2 = vadd.f32 %v1462_v59, %v1461_v56  ;;  %vm1320_vm12 = vcmp.eq.s32.totalorder %v2739_v13, %v2747_v27  ;;  %v2035_v24 = vsel %vm1317_vm9, 1.0, %v2351_v38  ;;  %v2036_v25 = vsel %vm1318_vm10, 1.0, %v2351_v38 }
 0x3e4   : > { %v2301_v28 = vpop.eup %2300  ;;  %v1436_v3 = vadd.f32 %v2295_v46, %v1435_v61  ;;  %v1439_v4 = vadd.f32 %v2299_v1, %v2297_v60  ;;  %v2037_v5 = vsel %vm1319_vm11, 1.0, %v2351_v38  ;;  %v2038_v9 = vsel %vm1320_vm12, 1.0, %v2351_v38 }
 0x3e5   : > { %v2303_v6 = vpop.eup %2302  ;;  %v1478_v7 = vadd.f32 %v1477_v2, %v1463_v0  ;;  %v1465_v10 = vmul.f32 %v2035_v24, %v2610_v32  ;;  %v1466_v14 = vmul.f32 %v2036_v25, %v2618_v36  ;;  %v1464_v16 = vmul.f32 %v2034_v55, %v2600_v29 }
 0x3e6   : > { %v2305_v12 = vpop.eup %2304  ;;  %1437 = vadd.xlane.f32.xlu1 %v1436_v3  ;;  %v1440_v15 = vadd.f32 %v2301_v28, %v1439_v4  ;;  %v1467_v18 = vmul.f32 %v2037_v5, %v2612_v33  ;;  %vm1321_vm13 = vcmp.eq.s32.totalorder %v2637_v47, %v2749_v35  ;;  %v1468_v20 = vmul.f32 %v2038_v9, %v2620_v37 }
 0x3e7   : > { %v2307_v19 = vpop.eup %2306  ;;  %v1482_v21 = vadd.f32 %v1466_v14, %v1465_v10  ;;  %vm1322_vm14 = vcmp.eq.s32.totalorder %v2723_v54, %v2749_v35  ;;  %vm1323_vm15 = vcmp.eq.s32.totalorder %v2734_v8, %v2749_v35  ;;  %vm1324_vm0 = vcmp.eq.s32.totalorder %v2739_v13, %v2749_v35 }
 0x3e8   : > { %v2309_v32 = vpop.eup %2308  ;;  %v1441_v36 = vadd.f32 %v2303_v6, %v1440_v15  ;;  %v1444_v23 = vadd.f32 %v2307_v19, %v2305_v12  ;;  %v2039_v29 = vsel %vm1321_vm13, 1.0, %v2351_v38  ;;  %v1479_v33 = vadd.f32 %v1478_v7, %v1464_v16 }
 0x3e9   : > { %v1483_v26 = vadd.f32 %v1482_v21, %v1467_v18  ;;  %v2040_v30 = vsel %vm1322_vm14, 1.0, %v2351_v38  ;;  %v2041_v37 = vsel %vm1323_vm15, 1.0, %v2351_v38  ;;  %v2311_v31 = vpop.eup %2310  ;;  %v2042_v39 = vsel %vm1324_vm0, 1.0, %v2351_v38 }
 0x3ea   : > { %1442 = vadd.xlane.f32.xlu0 %v1441_v36  ;;  %v1445_v34 = vadd.f32 %v2309_v32, %v1444_v23  ;;  %v1469_v40 = vmul.f32 %v2039_v29, %v2639_v48  ;;  %v1470_v41 = vmul.f32 %v2040_v30, %v2643_v52  ;;  %v1471_v44 = vmul.f32 %v2041_v37, %v2641_v49 }
 0x3eb   : > { %v1484_v42 = vadd.f32 %v1483_v26, %v1468_v20  ;;  %vm1325_vm1 = vcmp.eq.s32.totalorder %v2637_v47, %v2759_v50  ;;  %vm1326_vm2 = vcmp.eq.s32.totalorder %v2723_v54, %v2759_v50  ;;  %vm1327_vm3 = vcmp.eq.s32.totalorder %v2734_v8, %v2759_v50 }
 0x3ec   : > { %v1446_v45 = vadd.f32 %v2311_v31, %v1445_v34  ;;  %v1487_v46 = vadd.f32 %v1470_v41, %v1469_v40  ;;  %vm1328_vm4 = vcmp.eq.s32.totalorder %v2739_v13, %v2759_v50  ;;  %v1472_v48 = vmul.f32 %v2042_v39, %v2645_v53 }
 0x3ed   : > { %v2043_v52 = vsel %vm1325_vm1, 1.0, %v2351_v38  ;;  %v2044_v49 = vsel %vm1326_vm2, 1.0, %v2351_v38  ;;  %v2045_v55 = vsel %vm1327_vm3, 1.0, %v2351_v38  ;;  %vm1306_vm5 = vcmp.ge.s32.totalorder %v2736_v11, 0 }
 0x3ee   : > { %1447 = vadd.xlane.f32.xlu1 %v1446_v45  ;;  %1480 = vadd.xlane.f32.xlu0 %v1479_v33  ;;  %v1488_v56 = vadd.f32 %v1487_v46, %v1471_v44  ;;  %v1473_v54 = vmul.f32 %v2043_v52, %v2652_v57  ;;  %v1474_v59 = vmul.f32 %v2044_v49, %v2661_v62  ;;  %v2046_v8 = vsel %vm1328_vm4, 1.0, %v2351_v38 }
 0x3ef   : > { %v1475_v13 = vmul.f32 %v2045_v55, %v2654_v58  ;;  %v2047_v53 = vsel %vm1306_vm5, 1.0, %v2351_v38  ;;  %vm1307_vm6 = vcmp.ge.s32.totalorder %v2747_v27, 0  ;;  %vm1308_vm7 = vcmp.ge.s32.totalorder %v2749_v35, 0 }
 0x3f0   : > { %v1489_v60 = vadd.f32 %v1488_v56, %v1472_v48  ;;  %v1492_v61 = vadd.f32 %v1474_v59, %v1473_v54  ;;  %v2048_v57 = vsel %vm1307_vm6, 1.0, %v2351_v38  ;;  %v2049_v0 = vsel %vm1308_vm7, 1.0, %v2351_v38  ;;  %v2321_v56 = vld [vmem:[%s2956_s10] sm:$0xff] (!%p2051_p4)   ;;  %v2322_v59 = vld [vmem:[%s2956_s10 + $0x8] sm:$0xff] (!%p2051_p4)  }
 0x3f1   : > { %v1522_v62 = vadd.f32 %v2048_v57, %v2047_v53  ;;  %vm1309_vm8 = vcmp.ge.s32.totalorder %v2759_v50, 0  ;;  %v1476_v58 = vmul.f32 %v2046_v8, %v2663_v63  ;;  %vm1531_vm9 = vcmp.eq.s32.totalorder %v2637_v47, 0  ;;  %v2323_v8 = vld [vmem:[%s2956_s10 + $0x10] sm:$0xff] (!%p2051_p4)   ;;  %v2324_v53 = vld [vmem:[%s2956_s10 + $0x18] sm:$0xff] (!%p2051_p4)  }
 0x3f2   : > { %1485 = vadd.xlane.f32.xlu1 %v1484_v42  ;;  %1490 = vadd.xlane.f32.xlu0 %v1489_v60  ;;  %v1493_v1 = vadd.f32 %v1492_v61, %v1475_v13  ;;  %v2050_v2 = vsel %vm1309_vm8, 1.0, %v2351_v38  ;;  %vm1533_vm10 = vcmp.eq.s32.totalorder %v2637_v47, 1  ;;  %v2352_v54 = vmov (!%p2051_p4), 0.0   ;;  %v2329_v13 = vld [vmem:[%s2958_s12] sm:$0xff] (!%p2051_p4)   ;;  %v2330_v60 = vld [vmem:[%s2958_s12 + $0x8] sm:$0xff] (!%p2051_p4)   ;;  %v2331_v57 = vld [vmem:[%s2958_s12 + $0x10] sm:$0xff] (!%p2051_p4)  }
 0x3f3   : > { %v1523_v24 = vadd.f32 %v2049_v0, %v1522_v62  ;;  %2164 = vmatprep.subr.bf16.mxu0 (!%p2051_p4), %v2352_v54  ;;  %2184 = vmatprep.subr.bf16.mxu1 (!%p2051_p4), %v2352_v54  ;;  %vm2353_vm11 = vmmov (!%p2051_p4), 0   ;;  %v2325_v61 = vld [vmem:[%s2956_s10 + $0x20] sm:$0xff] (!%p2051_p4)   ;;  %v2326_v62 = vld [vmem:[%s2956_s10 + $0x28] sm:$0xff] (!%p2051_p4)   ;;  %v2332_v0 = vld [vmem:[%s2958_s12 + $0x18] sm:$0xff] (!%p2051_p4)   ;;  %vm1775_vm12 = vcmask (!%p2051_p4), 1041408   ;;  %vm1800_vm14 = vcmp.eq.s32.totalorder (!%p2051_p4), %v2637_v47, 2 }
 0x3f4   : > { %v1494_v28 = vadd.f32 %v1493_v1, %v1476_v58  ;;  %2165 = vmatpush3.bf16.msra.mxu0 (!%p2051_p4), %v2321_v56  ;;  %2180 = vmatprep.mubr.msk.bf16.mxu0 (!%p2051_p4), %vm2353_vm11, %v2352_v54  ;;  %v2327_v58 = vld [vmem:[%s2956_s10 + $0x30] sm:$0xff] (!%p2051_p4)   ;;  %v2328_v1 = vld [vmem:[%s2956_s10 + $0x38] sm:$0xff] (!%p2051_p4)  }
 0x3f5   : > { %v1524_v3 = vadd.f32 %v2050_v2, %v1523_v24  ;;  %2166 = vmatprep.subr.bf16.mxu0 (!%p2051_p4), %v2352_v54  ;;  %2200 = vmatprep.mubr.msk.bf16.mxu1 (!%p2051_p4), %vm2353_vm11, %v2352_v54  ;;  %v1541_v2 = vld [vmem:[%s2954_s8] sm:$0x3] (!%p2051_p4) }
 0x3f6   : > { %1495 = vadd.xlane.f32.xlu1 %v1494_v28  ;;  %2185 = vmatpush3.bf16.msra.mxu1 (!%p2051_p4), %v2329_v13  ;;  %v1542_v24 = vpack.c.bf16 (!%p2051_p4), %v1541_v2, %v1541_v2  ;;  %v2333_v28 = vld [vmem:[%s2958_s12 + $0x20] sm:$0xff] (!%p2051_p4)  }
 0x3f7   : > { %v1525_v21 = vrot.slane %v1524_v3, 4  ;;  %2186 = vmatprep.subr.bf16.mxu1 (!%p2051_p4), %v2352_v54 }
 0x3f8   : > { %2167 = vmatpush3.bf16.msra.mxu0 (!%p2051_p4), %v2322_v59 }
 0x3f9   : > { %v1526_v37 = vadd.f32 %v1525_v21, %v1524_v3  ;;  %2168 = vmatprep.subr.bf16.mxu0 (!%p2051_p4), %v2352_v54  ;;  %v2334_v3 = vld [vmem:[%s2958_s12 + $0x28] sm:$0xff] (!%p2051_p4)  }
 0x3fa   : > { %2187 = vmatpush3.bf16.msra.mxu1 (!%p2051_p4), %v2330_v60 }
 0x3fb   : > { %v1527_v40 = vrot.slane %v1526_v37, 2  ;;  %2188 = vmatprep.subr.bf16.mxu1 (!%p2051_p4), %v2352_v54 }
 0x3fc   : > { %2169 = vmatpush3.bf16.msra.mxu0 (!%p2051_p4), %v2323_v8 }
 0x3fd   : > { %v1528_v42 = vadd.f32 %v1527_v40, %v1526_v37  ;;  %2170 = vmatprep.subr.bf16.mxu0 (!%p2051_p4), %v2352_v54 }
 0x3fe   : > { %2189 = vmatpush3.bf16.msra.mxu1 (!%p2051_p4), %v2331_v57 }
 0x3ff   : > { %v1529_v46 = vrot.slane %v1528_v42, 1  ;;  %2190 = vmatprep.subr.bf16.mxu1 (!%p2051_p4), %v2352_v54 }
 0x400   : > { %2171 = vmatpush3.bf16.msra.mxu0 (!%p2051_p4), %v2324_v53 }
 0x401   : > { %v1530_v35 = vadd.f32 %v1529_v46, %v1528_v42  ;;  %2172 = vmatprep.subr.bf16.mxu0 (!%p2051_p4), %v2352_v54 }
 0x402   : > { %2191 = vmatpush3.bf16.msra.mxu1 (!%p2051_p4), %v2332_v0 }
 0x403   : > { %v1534_v49 = vsel %vm1533_vm10, %v1530_v35, 0.0  ;;  %2192 = vmatprep.subr.bf16.mxu1 (!%p2051_p4), %v2352_v54 }
 0x404   : > { %2173 = vmatpush3.bf16.msra.mxu0 (!%p2051_p4), %v2325_v61 }
 0x405   : > { %2174 = vmatprep.subr.bf16.mxu0 (!%p2051_p4), %v2352_v54 }
 0x406   : > { %2193 = vmatpush3.bf16.msra.mxu1 (!%p2051_p4), %v2333_v28 }
 0x407   : > { %2194 = vmatprep.subr.bf16.mxu1 (!%p2051_p4), %v2352_v54 }
 0x408   : > { %2175 = vmatpush3.bf16.msra.mxu0 (!%p2051_p4), %v2326_v62 }
 0x409   : > { %2176 = vmatprep.subr.bf16.mxu0 (!%p2051_p4), %v2352_v54 }
 0x40a   : > { %2195 = vmatpush3.bf16.msra.mxu1 (!%p2051_p4), %v2334_v3 }
 0x40b   : > { %2196 = vmatprep.subr.bf16.mxu1 (!%p2051_p4), %v2352_v54 }
 0x40c   : > { %2177 = vmatpush3.bf16.msra.mxu0 (!%p2051_p4), %v2327_v58 }
 0x40d   : > { %2178 = vmatprep.subr.bf16.mxu0 (!%p2051_p4), %v2352_v54 }
 0x410   : > { %2179 = vmatpush3.bf16.msra.mxu0 (!%p2051_p4), %v2328_v1 }
 0x413   : > { %2181 = vmatmul.mubr.bf16.vlgmr.msra.gmra.mrb[0].mxu0 (!%p2051_p4), %v1542_v24 }
 0x46f   : > { %v1433_v4 = vpop.xlane.xlu0 %1432 }
 0x470   : > { %2312 = vlog2.f32 %v1433_v4  ;;  %v2335_v4 = vld [vmem:[%s2958_s12 + $0x30] sm:$0xff] (!%p2051_p4)  }
 0x471   : > { %2197 = vmatpush3.bf16.msra.mxu1 (!%p2051_p4), %v2335_v4 }
 0x472   : > { %2198 = vmatprep.subr.bf16.mxu1 (!%p2051_p4), %v2352_v54 }
 0x473   : > { %v1438_v25 = vpop.xlane.xlu1 %1437 }
 0x474   : > { %2314 = vlog2.f32 %v1438_v25  ;;  %v2336_v25 = vld [vmem:[%s2958_s12 + $0x38] sm:$0xff] (!%p2051_p4)  }
 0x475   : > { %2199 = vmatpush3.bf16.msra.mxu1 (!%p2051_p4), %v2336_v25 }
 0x477   : > { %v1443_v5 = vpop.xlane.xlu0 %1442 }
 0x478   : > { %2316 = vlog2.f32 %v1443_v5  ;;  %v2052_v5 = vld [vmem:[%s2957_s11] ss:$0 sm:$0xff] (!%p2051_p4) }
 0x47a   : > { %v2313_v6 = vpop.eup %2312 }
 0x47b   : > { %v1450_v7 = vmul.f32 0.6931472, %v2313_v6  ;;  %v1448_v9 = vpop.xlane.xlu1 %1447  ;;  %v1481_v12 = vpop.xlane.xlu0 %1480 }
 0x47c   : > { %2318 = vlog2.f32 %v1448_v9 }
 0x47d   : > { %v1457_v63 = vadd.f32 %v1450_v7, %v2690_v17 }
 0x47e   : > { %v2315_v10 = vpop.eup %2314 }
 0x47f   : > { %v1452_v14 = vmul.f32 0.6931472, %v2315_v10  ;;  %v1497_v38 = vsub.f32 %v1457_v63, %v1481_v12  ;;  %v1486_v18 = vpop.xlane.xlu1 %1485  ;;  %v1491_v33 = vpop.xlane.xlu0 %1490 }
 0x481   : > { %v1458_v15 = vadd.f32 %v1452_v14, %v2700_v22  ;;  %v1501_v32 = vsel %vm1306_vm5, %v1497_v38, 0.0  ;;  %v2354_v38 = vmov (!%p2051_p4), 0  }
 0x482   : > { %v2317_v16 = vpop.eup %2316  ;;  %2320 = vset.pattern.permute.xlu0 (!%p2051_p4), %v2354_v38 }
 0x483   : > { %v1454_v19 = vmul.f32 0.6931472, %v2317_v16  ;;  %v1498_v20 = vsub.f32 %v1458_v15, %v1486_v18  ;;  %v1496_v39 = vpop.xlane.xlu1 %1495  ;;  %v2061_v15 = vld [vmem:[%s2959_s13] ss:$0 sm:$0xff] (!%p2051_p4) }
 0x485   : > { %v1502_v36 = vsel %vm1307_vm6, %v1498_v20, 0.0  ;;  %v1459_v23 = vadd.f32 %v1454_v19, %v2710_v43 }
 0x486   : > { %v2319_v17 = vpop.eup %2318  ;;  %v1505_v29 = vadd.f32 %v1502_v36, %v1501_v32  ;;  %v1768_v36 = vld [vmem:[%s2955_s9] sm:$0x3] (!%p2051_p4) }
 0x487   : > { %v1456_v26 = vmul.f32 0.6931472, %v2319_v17  ;;  %v1499_v30 = vsub.f32 %v1459_v23, %v1491_v33 }
 0x489   : > { %v1503_v22 = vsel %vm1308_vm7, %v1499_v30, 0.0  ;;  %v1460_v31 = vadd.f32 %v1456_v26, %v2720_v51 }
 0x48a   : > { %v1506_v34 = vadd.f32 %v1505_v29, %v1503_v22 }
 0x48b   : > { %v1500_v11 = vsub.f32 %v1460_v31, %v1496_v39 }
 0x48d   : > { %v1504_v27 = vsel %vm1309_vm8, %v1500_v11, 0.0 }
 0x48e   : > { %v1507_v43 = vadd.f32 %v1506_v34, %v1504_v27 }
 0x490   : > { %v1508_v41 = vrot.slane %v1507_v43, 4 }
 0x492   : > { %v1509_v44 = vadd.f32 %v1508_v41, %v1507_v43 }
 0x494   : > { %v1510_v45 = vrot.slane %v1509_v44, 2 }
 0x496   : > { %v1511_v48 = vadd.f32 %v1510_v45, %v1509_v44 }
 0x498   : > { %v1512_v52 = vrot.slane %v1511_v48, 1 }
 0x499   : > { %1540 = sbr.rel (%p2051_p4) target bundleno = 1819 (0x71b), region = 80 }
 0x49a   : > { %v1513_v51 = vadd.f32 %v1512_v52, %v1511_v48 }
 0x49c   : > { %v1532_v50 = vsel %vm1531_vm9, %v1513_v51, 0.0 }
 0x49d   : > { %v2850_v55 = vadd.f32 %v1534_v49, %v1532_v50 }
 0x49f   : > { %1536 = vst [vmem:[%s2848_s26] sm:$0x1] %v2850_v55 }
 0x4e6   : > { %v1648_v6 = vpop.f32.mrb[0].mxu0 }
 0x4e7   : > { %v1649_v7 = vadd.f32 %v2052_v5, %v1648_v6  ;;  %v2182_v9 = vpop.f32.mrb[1].mxu0 }
 0x4e8   : > { %v1651_v63 = vpop.f32.mrb[2].mxu0 }
 0x4e9   : > { %2337 = vtanh.f32 %v1649_v7  ;;  %v2183_v10 = vpop.f32.mrb[3].mxu0 }
 0x4f3   : > { %v2338_v14 = vpop.eup %2337 }
 0x4f4   : > { %v1655_v12 = vpack.c.bf16 %v2338_v14, %v2338_v14 }
 0x4f6   : > { %2201 = vmatmul.mubr.bf16.vlgmr.msra.gmra.mrb[0].mxu1 %v1655_v12 }
 0x5c9   : > { %v1761_v16 = vpop.f32.mrb[0].mxu1 }
 0x5ca   : > { %v1762_v18 = vadd.f32 %v2061_v15, %v1761_v16  ;;  %v2202_v19 = vpop.f32.mrb[1].mxu1 }
 0x5cb   : > { %v1764_v20 = vpop.f32.mrb[2].mxu1 }
 0x5cc   : > { %1767 = vst [vmem:[%s2462_s0] sm:$0x3] %v1762_v18  ;;  %v2203_v21 = vpop.f32.mrb[3].mxu1  ;;  %v1776_v32 = vsel %vm1775_vm12, %v1762_v18, -inf }
 0x5cd   : > { %1777 = vmax.xlane.f32.xlu0 %v1776_v32 }
 0x5e3   : > { %1770 = vperm.xlu0 %2320, %v1768_v36  }
 0x65a   : > { %v1778_v23 = vpop.xlane.xlu0 %1777 }
 0x65b   : > { %v1779_v17 = vsub.f32 %v1762_v18, %v1778_v23 }
 0x65d   : > { %v1780_v29 = vmul.f32 1.442695, %v1779_v17 }
 0x65f   : > { %2339 = vpow2.f32 %v1780_v29 }
 0x662   : > { %v1771_v33 = vpop.permute.xlu0 %1770 }
 0x663   : > { %vm1772_vm13 = vcmp.eq.s32.totalorder %v2637_v47, %v1771_v33 }
 0x664   : > { %v2070_v26 = vsel %vm1772_vm13, 1.0, %v2352_v54 }
 0x665   : > { %v1788_v37 = vmul.f32 %v2070_v26, %v1762_v18 }
 0x667   : > { %v1789_v31 = vsel %vm1775_vm12, %v1788_v37, 0.0 }
 0x669   : > { %v2340_v30 = vpop.eup %2339 }
 0x66a   : > { %v1782_v22 = vsel %vm1775_vm12, %v2340_v30, 0.0 }
 0x66b   : > { %1783 = vadd.xlane.f32.xlu1 %v1782_v22 }
 0x66f   : > { %1790 = vadd.xlane.f32.xlu1 %v1789_v31 }
 0x6f8   : > { %v1784_v34 = vpop.xlane.xlu1 %1783 }
 0x6f9   : > { %2341 = vlog2.f32 %v1784_v34 }
 0x6fc   : > { %v1791_v27 = vpop.xlane.xlu1 %1790 }
 0x703   : > { %v2342_v39 = vpop.eup %2341 }
 0x704   : > { %v1786_v11 = vmul.f32 0.6931472, %v2342_v39 }
 0x706   : > { %v1787_v40 = vadd.f32 %v1786_v11, %v1778_v23 }
 0x708   : > { %v1792_v43 = vsub.f32 %v1787_v40, %v1791_v27 }
 0x70a   : > { %v1793_v41 = vsel %vm1775_vm12, %v1792_v43, 0.0 }
 0x70b   : > { %v1794_v42 = vrot.slane %v1793_v41, 4 }
 0x70d   : > { %v1795_v44 = vadd.f32 %v1794_v42, %v1793_v41 }
 0x70f   : > { %v1796_v45 = vrot.slane %v1795_v44, 2 }
 0x711   : > { %v1797_v46 = vadd.f32 %v1796_v45, %v1795_v44 }
 0x713   : > { %v1798_v48 = vrot.slane %v1797_v46, 1 }
 0x715   : > { %v1799_v52 = vadd.f32 %v1798_v48, %v1797_v46 }
 0x717   : > { %v1801_v35 = vsel %vm1800_vm14, %v1799_v52, 0.0 }
 0x718   : > { %v1802_v51 = vadd.f32 %v1801_v35, %v2850_v55 }
 0x71a   : > { %1803 = vst [vmem:[%s2848_s26] sm:$0x1] %v1802_v51 }
 0x71b PF: > { %s2967_s0 = sld [smem:[#allocation2_spill]] }
 0x721   : > { %s27_s21 = sadd.s32 1, %s2967_s0  }
 0x722   : > { %p24_p5 = scmp.ge.s32.totalorder %s27_s21, 4  }
 0x724   :  { %26 = sbr.rel (!%p24_p5) target bundleno = 2 (0x2), region = 152 }

</bundles_post_ra>
